<compile_context>
chip_gen: v7x
topology: tpu7x:2x2x1
jax: 0.10.0
libtpu: 0.0.40
codegen_flags: <defaults>
</compile_context>

<pallas_src>
import math

import jax
import jax.numpy as jnp
from jax.experimental import pallas as pl
from jax.experimental.pallas import tpu as pltpu


def _round_up(n, m):
    return ((n + m - 1) // m) * m


# ---------------------------------------------------------------------------
# Kernel
# ---------------------------------------------------------------------------
def _fused_heads_kernel(x_ref, w1_ref, b1_ref, w2_ref, b2_ref, w3t_ref, b3_ref,
                        o_ref, z_ref):
    """One grid step == one batch tile; all 4 heads computed together."""
    H, HID, _ = w2_ref.shape

    x = x_ref[...]                                            # (TB, Fp) bf16

    # ---- Layer 1: all heads fused along the output (lane) dim ------------
    h1 = jnp.dot(x, w1_ref[...], preferred_element_type=jnp.float32)
    h1 = jnp.maximum(h1 + b1_ref[...], 0.0)                   # (TB, H*HID) f32
    h1 = h1.astype(jnp.bfloat16)                               # back to bf16
    # (Dropout is identity at inference.)

    # ---- Layer 2: per-head 128x128 matmuls on 128-aligned lane slices ----
    # Write each head's result directly into the f32 VMEM scratch (no
    # concatenate temp).  Slices are static and 128-aligned.
    for h in range(H):
        z_ref[:, h * HID:(h + 1) * HID] = jnp.dot(
            h1[:, h * HID:(h + 1) * HID], w2_ref[h],
            preferred_element_type=jnp.float32)
    h2 = jnp.maximum(z_ref[...] + b2_ref[...], 0.0)            # fused bias+ReLU
    h2 = h2.astype(jnp.bfloat16)

    # ---- Layer 3: all heads' readouts as one lane-contracting dot --------
    # Row h of w3t holds head h's readout vector in lanes [h*HID,(h+1)*HID)
    # (zeros elsewhere), so contracting the lane dim of h2 yields the (H, TB)
    # logits directly in the lane-dense output layout (no transpose needed).
    logits = jax.lax.dot_general(
        w3t_ref[...], h2,
        dimension_numbers=(((1,), (1,)), ((), ())),
        preferred_element_type=jnp.float32)                    # (H, TB)
    o_ref[...] = jax.nn.sigmoid(logits + b3_ref[...])


# ---------------------------------------------------------------------------
# Parameter packing
# ---------------------------------------------------------------------------
def pack_params(params):
    """Pack stacked per-head f32 weights into the kernel's fused bf16 layout."""
    w1, b1 = params["w1"], params["b1"]          # (H, F, HID), (H, 1, HID)
    w2, b2 = params["w2"], params["b2"]          # (H, HID, HID), (H, 1, HID)
    w3, b3 = params["w3"], params["b3"]          # (H, HID, 1), (H, 1, 1)
    H, F, HID = w1.shape
    Fp = _round_up(F, 128)                       # lane-pad the feature dim

    w1cat = jnp.concatenate([w1[h] for h in range(H)], axis=-1)   # (F, H*HID)
    w1cat = jnp.pad(w1cat, ((0, Fp - F), (0, 0)))                 # (Fp, H*HID)
    b1cat = jnp.concatenate([b1[h] for h in range(H)], axis=-1)   # (1, H*HID)
    b2cat = jnp.concatenate([b2[h] for h in range(H)], axis=-1)   # (1, H*HID)

    # Layer-3 readout rows: row h carries head h's w3 in its own lane block.
    w3t = jnp.zeros((H, H * HID), jnp.float32)
    for h in range(H):
        w3t = w3t.at[h, h * HID:(h + 1) * HID].set(w3[h, :, 0])
    b3c = b3[:, 0, :]                                             # (H, 1)

    return {
        "w1": w1cat.astype(jnp.bfloat16),        # bf16 MXU operands
        "w2": w2.astype(jnp.bfloat16),
        "w3t": w3t.astype(jnp.bfloat16),
        "b1": b1cat.astype(jnp.float32),         # biases stay f32 (added to
        "b2": b2cat.astype(jnp.float32),         #  the f32 accumulations)
        "b3": b3c.astype(jnp.float32),
    }


# ---------------------------------------------------------------------------
# Tile / VMEM budgeting
# ---------------------------------------------------------------------------
_VMEM_TILE_BUDGET = 40 * 1024 * 1024   # stay well under v7x's 64 MiB physical


def _tb_vmem_bytes(tb, Fp, N1):
    """Rough VMEM footprint for one batch tile (bf16 operands, f32 accum)."""
    x_db = 2 * tb * Fp * 2                       # double-buffered x tile (bf16)
    w_res = Fp * N1 * 2 + 4 * 128 * 128 * 2 + N1 * 2 * 2 + 2 * N1 * 4 + 8 * 4
    z_scr = tb * N1 * 4                          # layer-2 f32 scratch
    interm = 4 * tb * N1 * 4                     # h1/h2/etc compiler temps
    out_db = 2 * 4 * tb * 4                      # double-buffered (H, tb) out
    return x_db + w_res + z_scr + interm + out_db


def _pick_tile(B, block_b, Fp, N1):
    """Choose (tb, padded_B).  Minimize padding, prefer >=2 tiles (v7x has
    2 TensorCores and the grid axis is the only sharding handle), then prefer
    the largest tile; cap the tile so the VMEM footprint fits the budget."""
    bp128 = _round_up(max(B, 1), 128)
    cap = _round_up(max(block_b, 128), 128)
    while cap > 128 and _tb_vmem_bytes(cap, Fp, N1) > _VMEM_TILE_BUDGET:
        cap -= 128
    cap = min(cap, bp128)

    best = None
    for tb in range(128, cap + 1, 128):
        bp = _round_up(bp128, tb)
        n_tiles = bp // tb
        single_tile_penalty = 0 if (n_tiles >= 2 or bp128 <= 128) else 1
        key = (bp, single_tile_penalty, -tb)     # pad waste > megacore > size
        if best is None or key < best[0]:
            best = (key, tb, bp)
    _, tb, bp = best
    return tb, bp


# ---------------------------------------------------------------------------
# Forward wrapper
# ---------------------------------------------------------------------------
def recsys_neural1_forward(x, packed, *, block_b=1024):
    """x: (B, F) float32.  packed: output of pack_params().
    Returns (reply, retweet, retweet_comment, like), each of shape (B,)."""
    B, F = x.shape
    Fp, N1 = packed["w1"].shape                  # F padded to 128, H*HID
    H, HID, _ = packed["w2"].shape

    tb, bp = _pick_tile(B, block_b, Fp, N1)

    # Zero-pad features (exact: padded x columns meet zero-padded w1 rows)
    # and batch (padded rows are discarded after the kernel); cast to bf16.
    if Fp != F or bp != B:
        x = jnp.pad(x, ((0, bp - B), (0, Fp - F)))
    x = x.astype(jnp.bfloat16)

    vmem_limit = int(min(max(2 * _tb_vmem_bytes(tb, Fp, N1), 16 * 1024 * 1024),
                         48 * 1024 * 1024))
    resident = pl.Buffered(1)                    # constant-index weights:
                                                 # single-buffered residents

    out = pl.pallas_call(
        _fused_heads_kernel,
        out_shape=jax.ShapeDtypeStruct((H, bp), jnp.float32),
        grid_spec=pltpu.PrefetchScalarGridSpec(
            num_scalar_prefetch=0,
            grid=(bp // tb,),                                    # batch tiles
            in_specs=[
                pl.BlockSpec((tb, Fp), lambda i: (i, 0)),        # x (tiled)
                pl.BlockSpec((Fp, N1), lambda i: (0, 0),
                             pipeline_mode=resident),            # W1 fused
                pl.BlockSpec((1, N1), lambda i: (0, 0),
                             pipeline_mode=resident),            # b1 fused
                pl.BlockSpec((H, HID, HID), lambda i: (0, 0, 0),
                             pipeline_mode=resident),            # W2 stacked
                pl.BlockSpec((1, N1), lambda i: (0, 0),
                             pipeline_mode=resident),            # b2 fused
                pl.BlockSpec((H, N1), lambda i: (0, 0),
                             pipeline_mode=resident),            # W3 readout rows
                pl.BlockSpec((H, 1), lambda i: (0, 0),
                             pipeline_mode=resident),            # b3
            ],
            out_specs=pl.BlockSpec((H, tb), lambda i: (0, i)),   # lane-dense (H,B)
            scratch_shapes=[pltpu.VMEM((tb, N1), jnp.float32)],  # layer-2 acc
        ),
        compiler_params=pltpu.CompilerParams(
            dimension_semantics=("parallel",),                   # megacore on v7x
            vmem_limit_bytes=vmem_limit),
    )(x, packed["w1"], packed["b1"], packed["w2"], packed["b2"],
      packed["w3t"], packed["b3"])

    preds = out[:, :B]                   # (H, B) — PyTorch .squeeze() semantics
    # Head order matches RecSysNeural1.forward return order.
    return preds[0], preds[1], preds[2], preds[3]


# ---------------------------------------------------------------------------
# Param init + plain-JAX reference (for the self-check)
# ---------------------------------------------------------------------------
def init_params(key, n_input_features, hidden=128, n_heads=4):
    """Deterministic PyTorch-style (uniform +-1/sqrt(fan_in)) init for the
    4 stacked SimpleFFN heads, in return order (reply, retweet,
    retweet_comment, like)."""
    ks = jax.random.split(key, 6)
    F, H, HID = n_input_features, n_heads, hidden

    def u(k, shape, fan_in):
        bound = 1.0 / math.sqrt(fan_in)
        return jax.random.uniform(k, shape, jnp.float32, -bound, bound)

    return {
        "w1": u(ks[0], (H, F, HID), F),
        "b1": u(ks[1], (H, 1, HID), F),
        "w2": u(ks[2], (H, HID, HID), HID),
        "b2": u(ks[3], (H, 1, HID), HID),
        "w3": u(ks[4], (H, HID, 1), HID),
        "b3": u(ks[5], (H, 1, 1), HID),
    }


def _reference(x, params):
    """Plain-JAX f32 reference (dropout is identity at inference)."""
    outs = []
    for h in range(params["w1"].shape[0]):
        z = jnp.maximum(x @ params["w1"][h] + params["b1"][h], 0.0)
        z = jnp.maximum(z @ params["w2"][h] + params["b2"][h], 0.0)
        z = jax.nn.sigmoid(z @ params["w3"][h] + params["b3"][h])
        outs.append(z[:, 0])
    return tuple(outs)


if __name__ == "__main__":
    B, F = 8, 32                       # small batch / n_input_features
    key = jax.random.PRNGKey(0)
    k_x, k_p = jax.random.split(key)

    x = jax.random.normal(k_x, (B, F), jnp.float32)
    params = init_params(k_p, F)
    packed = pack_params(params)

    preds = recsys_neural1_forward(x, packed)
    preds = jax.block_until_ready(preds)

    refs = _reference(x, params)
    for p, r in zip(preds, refs):
        assert p.shape == (B,)
        # bf16 MXU operands (f32 accumulation) -> relaxed tolerance vs f32 ref.
        assert jnp.allclose(p, r, atol=2e-2, rtol=2e-2), \
            float(jnp.max(jnp.abs(p - r)))

    print("KERNEL_OK")
</pallas_src>

<mosaic_0001>
module attributes {stable_mosaic.version = 11 : i64} {
  func.func @_fused_heads_kernel(%arg0: i32, %arg1: memref<128x128xbf16, #tpu.memory_space<vmem>>, %arg2: memref<128x512xbf16, #tpu.memory_space<vmem>>, %arg3: memref<1x512xf32, #tpu.memory_space<vmem>>, %arg4: memref<4x128x128xbf16, #tpu.memory_space<vmem>>, %arg5: memref<1x512xf32, #tpu.memory_space<vmem>>, %arg6: memref<4x512xbf16, #tpu.memory_space<vmem>>, %arg7: memref<4x1xf32, #tpu.memory_space<vmem>>, %arg8: memref<4x128xf32, #tpu.memory_space<vmem>>, %arg9: memref<128x512xf32, #tpu.memory_space<vmem>>) attributes {dimension_semantics = [#tpu.dimension_semantics<parallel>], iteration_bounds = array<i64: 1>, scalar_prefetch = 0 : i64, scratch_operands = 1 : i64, tpu.core_type = #tpu.core_type<tc>, window_params = [{transform_indices = @transform_0, window_bounds = array<i64: 128, 128>}, {pipeline_mode = #tpu.pipeline_mode<synchronous>, transform_indices = @transform_1, window_bounds = array<i64: 128, 512>}, {pipeline_mode = #tpu.pipeline_mode<synchronous>, transform_indices = @transform_2, window_bounds = array<i64: 1, 512>}, {pipeline_mode = #tpu.pipeline_mode<synchronous>, transform_indices = @transform_3, window_bounds = array<i64: 4, 128, 128>}, {pipeline_mode = #tpu.pipeline_mode<synchronous>, transform_indices = @transform_4, window_bounds = array<i64: 1, 512>}, {pipeline_mode = #tpu.pipeline_mode<synchronous>, transform_indices = @transform_5, window_bounds = array<i64: 4, 512>}, {pipeline_mode = #tpu.pipeline_mode<synchronous>, transform_indices = @transform_6, window_bounds = array<i64: 4, 1>}, {transform_indices = @transform_7, window_bounds = array<i64: 4, 128>}]} {
    %c0 = arith.constant 0 : index
    %c0_0 = arith.constant 0 : index
    %0 = vector.load %arg1[%c0, %c0_0] : memref<128x128xbf16, #tpu.memory_space<vmem>>, vector<128x128xbf16>
    %c0_1 = arith.constant 0 : index
    %c0_2 = arith.constant 0 : index
    %1 = vector.load %arg2[%c0_1, %c0_2] : memref<128x512xbf16, #tpu.memory_space<vmem>>, vector<128x512xbf16>
    %cst = arith.constant dense<0.000000e+00> : vector<128x512xf32>
    %2 = tpu.matmul %0, %1, %cst {dimension_numbers = #tpu.dot_dimension_numbers<[1], [0], [0], [1], [0, 0, 1, 1], [], []>} : vector<128x128xbf16>, vector<128x512xbf16>, vector<128x512xf32> -> vector<128x512xf32>
    %c0_3 = arith.constant 0 : index
    %c0_4 = arith.constant 0 : index
    %3 = vector.load %arg3[%c0_3, %c0_4] : memref<1x512xf32, #tpu.memory_space<vmem>>, vector<1x512xf32>
    %4 = vector.broadcast %3 : vector<1x512xf32> to vector<128x512xf32>
    %5 = arith.addf %2, %4 : vector<128x512xf32>
    %cst_5 = arith.constant 0.000000e+00 : f32
    %6 = vector.broadcast %cst_5 : f32 to vector<128x512xf32>
    %7 = arith.maximumf %5, %6 : vector<128x512xf32>
    %8 = arith.truncf %7 : vector<128x512xf32> to vector<128x512xbf16>
    %9 = vector.extract_strided_slice %8 {offsets = [0, 0], sizes = [128, 128], strides = [1, 1]} : vector<128x512xbf16> to vector<128x128xbf16>
    %c0_6 = arith.constant 0 : index
    %c0_7 = arith.constant 0 : index
    %c0_8 = arith.constant 0 : index
    %10 = vector.load %arg4[%c0_6, %c0_7, %c0_8] : memref<4x128x128xbf16, #tpu.memory_space<vmem>>, vector<1x128x128xbf16>
    %11 = vector.shape_cast %10 : vector<1x128x128xbf16> to vector<128x128xbf16>
    %cst_9 = arith.constant dense<0.000000e+00> : vector<128x128xf32>
    %12 = tpu.matmul %9, %11, %cst_9 {dimension_numbers = #tpu.dot_dimension_numbers<[1], [0], [0], [1], [0, 0, 1, 1], [], []>} : vector<128x128xbf16>, vector<128x128xbf16>, vector<128x128xf32> -> vector<128x128xf32>
    %c0_10 = arith.constant 0 : index
    %c0_11 = arith.constant 0 : index
    %13 = vector.load %arg9[%c0_10, %c0_11] : memref<128x512xf32, #tpu.memory_space<vmem>>, vector<128x128xf32>
    tpu.vector_store %arg9[%c0_10, %c0_11], %12 {strides = array<i32>} : memref<128x512xf32, #tpu.memory_space<vmem>>, vector<128x128xf32>,
    %14 = vector.extract_strided_slice %8 {offsets = [0, 128], sizes = [128, 128], strides = [1, 1]} : vector<128x512xbf16> to vector<128x128xbf16>
    %c1 = arith.constant 1 : index
    %c0_12 = arith.constant 0 : index
    %c0_13 = arith.constant 0 : index
    %15 = vector.load %arg4[%c1, %c0_12, %c0_13] : memref<4x128x128xbf16, #tpu.memory_space<vmem>>, vector<1x128x128xbf16>
    %16 = vector.shape_cast %15 : vector<1x128x128xbf16> to vector<128x128xbf16>
    %cst_14 = arith.constant dense<0.000000e+00> : vector<128x128xf32>
    %17 = tpu.matmul %14, %16, %cst_14 {dimension_numbers = #tpu.dot_dimension_numbers<[1], [0], [0], [1], [0, 0, 1, 1], [], []>} : vector<128x128xbf16>, vector<128x128xbf16>, vector<128x128xf32> -> vector<128x128xf32>
    %c0_15 = arith.constant 0 : index
    %c128 = arith.constant 128 : index
    %18 = vector.load %arg9[%c0_15, %c128] : memref<128x512xf32, #tpu.memory_space<vmem>>, vector<128x128xf32>
    tpu.vector_store %arg9[%c0_15, %c128], %17 {strides = array<i32>} : memref<128x512xf32, #tpu.memory_space<vmem>>, vector<128x128xf32>,
    %19 = vector.extract_strided_slice %8 {offsets = [0, 256], sizes = [128, 128], strides = [1, 1]} : vector<128x512xbf16> to vector<128x128xbf16>
    %c2 = arith.constant 2 : index
    %c0_16 = arith.constant 0 : index
    %c0_17 = arith.constant 0 : index
    %20 = vector.load %arg4[%c2, %c0_16, %c0_17] : memref<4x128x128xbf16, #tpu.memory_space<vmem>>, vector<1x128x128xbf16>
    %21 = vector.shape_cast %20 : vector<1x128x128xbf16> to vector<128x128xbf16>
    %cst_18 = arith.constant dense<0.000000e+00> : vector<128x128xf32>
    %22 = tpu.matmul %19, %21, %cst_18 {dimension_numbers = #tpu.dot_dimension_numbers<[1], [0], [0], [1], [0, 0, 1, 1], [], []>} : vector<128x128xbf16>, vector<128x128xbf16>, vector<128x128xf32> -> vector<128x128xf32>
    %c0_19 = arith.constant 0 : index
    %c256 = arith.constant 256 : index
    %23 = vector.load %arg9[%c0_19, %c256] : memref<128x512xf32, #tpu.memory_space<vmem>>, vector<128x128xf32>
    tpu.vector_store %arg9[%c0_19, %c256], %22 {strides = array<i32>} : memref<128x512xf32, #tpu.memory_space<vmem>>, vector<128x128xf32>,
    %24 = vector.extract_strided_slice %8 {offsets = [0, 384], sizes = [128, 128], strides = [1, 1]} : vector<128x512xbf16> to vector<128x128xbf16>
    %c3 = arith.constant 3 : index
    %c0_20 = arith.constant 0 : index
    %c0_21 = arith.constant 0 : index
    %25 = vector.load %arg4[%c3, %c0_20, %c0_21] : memref<4x128x128xbf16, #tpu.memory_space<vmem>>, vector<1x128x128xbf16>
    %26 = vector.shape_cast %25 : vector<1x128x128xbf16> to vector<128x128xbf16>
    %cst_22 = arith.constant dense<0.000000e+00> : vector<128x128xf32>
    %27 = tpu.matmul %24, %26, %cst_22 {dimension_numbers = #tpu.dot_dimension_numbers<[1], [0], [0], [1], [0, 0, 1, 1], [], []>} : vector<128x128xbf16>, vector<128x128xbf16>, vector<128x128xf32> -> vector<128x128xf32>
    %c0_23 = arith.constant 0 : index
    %c384 = arith.constant 384 : index
    %28 = vector.load %arg9[%c0_23, %c384] : memref<128x512xf32, #tpu.memory_space<vmem>>, vector<128x128xf32>
    tpu.vector_store %arg9[%c0_23, %c384], %27 {strides = array<i32>} : memref<128x512xf32, #tpu.memory_space<vmem>>, vector<128x128xf32>,
    %c0_24 = arith.constant 0 : index
    %c0_25 = arith.constant 0 : index
    %29 = vector.load %arg9[%c0_24, %c0_25] : memref<128x512xf32, #tpu.memory_space<vmem>>, vector<128x512xf32>
    %c0_26 = arith.constant 0 : index
    %c0_27 = arith.constant 0 : index
    %30 = vector.load %arg5[%c0_26, %c0_27] : memref<1x512xf32, #tpu.memory_space<vmem>>, vector<1x512xf32>
    %31 = vector.broadcast %30 : vector<1x512xf32> to vector<128x512xf32>
    %32 = arith.addf %29, %31 : vector<128x512xf32>
    %cst_28 = arith.constant 0.000000e+00 : f32
    %33 = vector.broadcast %cst_28 : f32 to vector<128x512xf32>
    %34 = arith.maximumf %32, %33 : vector<128x512xf32>
    %35 = arith.truncf %34 : vector<128x512xf32> to vector<128x512xbf16>
    %c0_29 = arith.constant 0 : index
    %c0_30 = arith.constant 0 : index
    %36 = vector.load %arg6[%c0_29, %c0_30] : memref<4x512xbf16, #tpu.memory_space<vmem>>, vector<4x512xbf16>
    %cst_31 = arith.constant dense<0.000000e+00> : vector<4x128xf32>
    %37 = tpu.matmul %36, %35, %cst_31 {dimension_numbers = #tpu.dot_dimension_numbers<[1], [1], [0], [0], [0, 0, 1, 0], [], []>} : vector<4x512xbf16>, vector<128x512xbf16>, vector<4x128xf32> -> vector<4x128xf32>
    %c0_32 = arith.constant 0 : index
    %c0_33 = arith.constant 0 : index
    %38 = vector.load %arg7[%c0_32, %c0_33] : memref<4x1xf32, #tpu.memory_space<vmem>>, vector<4x1xf32>
    %39 = vector.broadcast %38 : vector<4x1xf32> to vector<4x128xf32>
    %40 = arith.addf %37, %39 : vector<4x128xf32>
    %41 = arith.negf %40 : vector<4x128xf32>
    %42 = math.exp %41 : vector<4x128xf32>
    %cst_34 = arith.constant 1.000000e+00 : f32
    %43 = vector.broadcast %cst_34 : f32 to vector<4x128xf32>
    %44 = arith.addf %43, %42 : vector<4x128xf32>
    %45 = arith.divf %43, %44 : vector<4x128xf32>
    %c0_35 = arith.constant 0 : index
    %c0_36 = arith.constant 0 : index
    %46 = vector.load %arg8[%c0_35, %c0_36] : memref<4x128xf32, #tpu.memory_space<vmem>>, vector<4x128xf32>
    tpu.vector_store %arg8[%c0_35, %c0_36], %45 {strides = array<i32>} : memref<4x128xf32, #tpu.memory_space<vmem>>, vector<4x128xf32>,
    return
  }
  func.func @transform_0(%arg0: i32) -> (i32, i32) {
    %c0_i32 = arith.constant 0 : i32
    %c0_i32_0 = arith.constant 0 : i32
    return %arg0, %c0_i32 : i32, i32
  }
  func.func @transform_1(%arg0: i32) -> (i32, i32) {
    %c0_i32 = arith.constant 0 : i32
    %c0_i32_0 = arith.constant 0 : i32
    %c0_i32_1 = arith.constant 0 : i32
    return %c0_i32, %c0_i32_0 : i32, i32
  }
  func.func @transform_2(%arg0: i32) -> (i32, i32) {
    %c0_i32 = arith.constant 0 : i32
    %c0_i32_0 = arith.constant 0 : i32
    %c0_i32_1 = arith.constant 0 : i32
    return %c0_i32, %c0_i32_0 : i32, i32
  }
  func.func @transform_3(%arg0: i32) -> (i32, i32, i32) {
    %c0_i32 = arith.constant 0 : i32
    %c0_i32_0 = arith.constant 0 : i32
    %c0_i32_1 = arith.constant 0 : i32
    %c0_i32_2 = arith.constant 0 : i32
    return %c0_i32, %c0_i32_0, %c0_i32_1 : i32, i32, i32
  }
  func.func @transform_4(%arg0: i32) -> (i32, i32) {
    %c0_i32 = arith.constant 0 : i32
    %c0_i32_0 = arith.constant 0 : i32
    %c0_i32_1 = arith.constant 0 : i32
    return %c0_i32, %c0_i32_0 : i32, i32
  }
  func.func @transform_5(%arg0: i32) -> (i32, i32) {
    %c0_i32 = arith.constant 0 : i32
    %c0_i32_0 = arith.constant 0 : i32
    %c0_i32_1 = arith.constant 0 : i32
    return %c0_i32, %c0_i32_0 : i32, i32
  }
  func.func @transform_6(%arg0: i32) -> (i32, i32) {
    %c0_i32 = arith.constant 0 : i32
    %c0_i32_0 = arith.constant 0 : i32
    %c0_i32_1 = arith.constant 0 : i32
    return %c0_i32, %c0_i32_0 : i32, i32
  }
  func.func @transform_7(%arg0: i32) -> (i32, i32) {
    %c0_i32 = arith.constant 0 : i32
    %c0_i32_0 = arith.constant 0 : i32
    return %c0_i32, %arg0 : i32, i32
  }
}

</mosaic_0001>

<bundles_post_ra>
// kernel: tpu_custom_call.1
= control target key start
LH: loop header
LB: loop body
LE: loop exit
PB: predicated region body
PF: predicated region fallthrough
CT: control target
= control target key end

     0   :  { %12 = vsyncpa [#allocation4], 0  ;;  %s2570_s0 = inlined_call_operand.hbm [shape: bf16[128,128], index: 0, kind: input, shape index: {}]   ;;  %s2571_s1 = inlined_call_operand.hbm [shape: bf16[128,512], index: 1, kind: input, shape index: {}]   ;;  %s2572_s2 = inlined_call_operand.vmem [shape: f32[1,512], index: 2, kind: input, shape index: {}]   ;;  %s2573_s3 = inlined_call_operand.hbm [shape: bf16[4,128,128], index: 3, kind: input, shape index: {}]   ;;  %s2574_s4 = inlined_call_operand.vmem [shape: f32[1,512], index: 4, kind: input, shape index: {}]   ;;  %s2575_s5 = inlined_call_operand.vmem [shape: bf16[4,512], index: 5, kind: input, shape index: {}]   ;;  %s2576_s6 = inlined_call_operand.vmem [shape: f32[4,1], index: 6, kind: input, shape index: {}]   ;;  %s2577_s7 = inlined_call_operand.hbm [shape: f32[4,128], index: 7, kind: output, shape index: {}]  }
   0x1   :  { %13 = vsyncpa [#allocation7], 0 }
   0x2   :  { %14 = vsyncpa [#allocation5], 0  ;;  %s2223_s24 = smov [#allocation6]   ;;  %s2129_s28 = scalar_lea.hbm %s2571_s1, 4096 }
   0x3   :  { %s32_s25 = sshll.u32 %s2223_s24, 4  ;;  %p2130_p0 = scmp.ne.s32.totalorder %s2571_s1, %s2129_s28  ;;  %s33_s25 = int_to_ptr.vmem [resolvable:$true] %s32_s25 }
   0x4   :  { %p2133_p1 = scmp.lt.u32.totalorder %s2129_s28, %s2571_s1 }
   0x6   :  { %p2135_p2 = pnand %p2133_p1, %p2130_p0 }
   0x8   :  { %2138 = shalt.err (!%p2135_p2)
}
   0x9   :  { %s2139_s10 = scalar_lea.vmem %s33_s25, 4096  ;;  %p2144_p4 = scmp.lt.s32.totalorder %s33_s25, %s33_s25 }
   0xa   :  { %p2140_p3 = scmp.ne.s32.totalorder %s33_s25, %s2139_s10  ;;  %p2145_p5 = scmp.lt.s32.totalorder %s2139_s10, %s2139_s10 }
   0xc   :  { %p2146_p6 = por %p2145_p5, %p2144_p4 }
   0xe   :  { %p2147_p7 = pnand %p2146_p6, %p2140_p3 }
  0x10   :  { %2150 = shalt.err (!%p2147_p7)
}
  0x11   :  { %s2224_s11 = smov 256   ;;  %s2225_s12 = smov 16  }
  0x12   :  { %38 = dma.hbm_to_vmem [thread:$0]  %s2571_s1, 4096, %s33_s25, [#allocation7], %s2224_s11, %s2224_s11, %s2225_s12  }
  0x13   :  { %s2226_s15 = smov [#allocation3]   ;;  %s2151_s19 = scalar_lea.hbm %s2570_s0, 1024 }
  0x14   :  { %s20_s16 = sshll.u32 %s2226_s15, 4  ;;  %p2152_p8 = scmp.ne.s32.totalorder %s2570_s0, %s2151_s19  ;;  %s21_s16 = int_to_ptr.vmem [resolvable:$true] %s20_s16 }
  0x15   :  { %p2155_p9 = scmp.lt.u32.totalorder %s2151_s19, %s2570_s0 }
  0x17   :  { %p2157_p10 = pnand %p2155_p9, %p2152_p8 }
  0x19   :  { %2160 = shalt.err (!%p2157_p10)
}
  0x1a   :  { %s2161_s24 = scalar_lea.vmem %s21_s16, 1024  ;;  %p2166_p12 = scmp.lt.s32.totalorder %s21_s16, %s21_s16 }
  0x1b   :  { %p2162_p11 = scmp.ne.s32.totalorder %s21_s16, %s2161_s24  ;;  %p2167_p13 = scmp.lt.s32.totalorder %s2161_s24, %s2161_s24 }
  0x1d   :  { %p2168_p0 = por %p2167_p13, %p2166_p12 }
  0x1f   :  { %p2169_p1 = pnand %p2168_p0, %p2162_p11 }
  0x21   :  { %2172 = shalt.err (!%p2169_p1)
}
  0x22   :  { %s2227_s1 = smov 64   ;;  %s2228_s25 = smov 4  }
  0x23   :  { %26 = dma.hbm_to_vmem [thread:$0]  %s2570_s0, 1024, %s21_s16, [#allocation4], %s2227_s1, %s2227_s1, %s2228_s25  }
  0x24   :  { %s2229_s28 = smov [#allocation8]   ;;  %s2173_s9 = scalar_lea.hbm %s2573_s3, 4096 }
  0x25   :  { %s46_s29 = sshll.u32 %s2229_s28, 4  ;;  %p2174_p2 = scmp.ne.s32.totalorder %s2573_s3, %s2173_s9  ;;  %s47_s29 = int_to_ptr.vmem [resolvable:$true] %s46_s29 }
  0x26   :  { %p2177_p3 = scmp.lt.u32.totalorder %s2173_s9, %s2573_s3 }
  0x28   :  { %p2179_p4 = pnand %p2177_p3, %p2174_p2 }
  0x2a   :  { %2182 = shalt.err (!%p2179_p4)
}
  0x2b   :  { %s2183_s14 = scalar_lea.vmem %s47_s29, 4096  ;;  %p2188_p6 = scmp.lt.s32.totalorder %s47_s29, %s47_s29 }
  0x2c   :  { %p2184_p5 = scmp.ne.s32.totalorder %s47_s29, %s2183_s14  ;;  %p2189_p7 = scmp.lt.s32.totalorder %s2183_s14, %s2183_s14 }
  0x2e   :  { %p2190_p8 = por %p2189_p7, %p2188_p6 }
  0x30   :  { %p2191_p9 = pnand %p2190_p8, %p2184_p5 }
  0x32   :  { %2194 = shalt.err (!%p2191_p9)
}
  0x33   :  { %52 = dma.hbm_to_vmem [thread:$0]  %s2573_s3, 4096, %s47_s29, [#allocation7], %s2227_s1, %s2227_s1, %s2228_s25  }
  0x34   :  { %2217 = dma.done.wait [#allocation4], 1024  }
  0x35   :  { %2218 = vsyncadd [#allocation4], 4294966272 }
  0x36   :  { %2219 = dma.done.wait [#allocation7], 8192  }
  0x37   :  { %2220 = vsyncadd [#allocation7], 4294959104  ;;  %v2230_v0 = vmov 0   ;;  %v2036_v1 = vld [vmem:[#allocation6 + $0x4] ss:$16 sps:$4 sm:$0xff]   ;;  %v2095_v31 = vld [vmem:[#allocation8 + $0x8] sm:$0xff]   ;;  %v119_v59 = vlaneseq }
  0x38   :  { %379 = vmatprep.mubr.bf16.mxu0 %v2230_v0  ;;  %492 = vmatprep.mubr.bf16.mxu1 %v2230_v0  ;;  %v2038_v2 = vld [vmem:[#allocation6] ss:$16 sps:$4 sm:$0xff]   ;;  %v2039_v3 = vld [vmem:[#allocation6 + $0x24] ss:$16 sps:$4 sm:$0xff]   ;;  %v2063_v11 = vld [vmem:[#allocation6 + $0xc] ss:$16 sps:$4 sm:$0xff]  }
  0x39   :  { %2035 = vset.pattern.permute.xlu0 %v2230_v0  ;;  %347 = vmatprep.subr.bf16.mxu0 %v2036_v1  ;;  %v2041_v4 = vld [vmem:[#allocation6 + $0x20] ss:$16 sps:$4 sm:$0xff]   ;;  %v2042_v5 = vld [vmem:[#allocation6 + $0x44] ss:$16 sps:$4 sm:$0xff]   ;;  %v2065_v12 = vld [vmem:[#allocation6 + $0x8] ss:$16 sps:$4 sm:$0xff]  }
  0x3a   :  { %348 = vmatpush1.bf16.msra.mxu0 %v2038_v2  ;;  %v2044_v6 = vld [vmem:[#allocation6 + $0x40] ss:$16 sps:$4 sm:$0xff]   ;;  %v2045_v7 = vld [vmem:[#allocation6 + $0x64] ss:$16 sps:$4 sm:$0xff]   ;;  %v2066_v13 = vld [vmem:[#allocation6 + $0x2c] ss:$16 sps:$4 sm:$0xff]   ;;  %460 = vmatprep.subr.bf16.mxu1 %v2063_v11 }
  0x3b   :  { %349 = vmatprep.subr.bf16.mxu0 %v2039_v3  ;;  %v2047_v8 = vld [vmem:[#allocation6 + $0x60] ss:$16 sps:$4 sm:$0xff]   ;;  %v2048_v9 = vld [vmem:[#allocation6 + $0x84] ss:$16 sps:$4 sm:$0xff]   ;;  %461 = vmatpush1.bf16.msra.mxu1 %v2065_v12  ;;  %v2068_v15 = vld [vmem:[#allocation6 + $0x28] ss:$16 sps:$4 sm:$0xff]  }
  0x3c   :  { %v2050_v10 = vld [vmem:[#allocation6 + $0x80] ss:$16 sps:$4 sm:$0xff]   ;;  %v2051_v14 = vld [vmem:[#allocation6 + $0xa4] ss:$16 sps:$4 sm:$0xff]   ;;  %462 = vmatprep.subr.bf16.mxu1 %v2066_v13  ;;  %v2070_v16 = vld [vmem:[#allocation6 + $0x4c] ss:$16 sps:$4 sm:$0xff]  }
  0x3d   :  { %v2053_v17 = vld [vmem:[#allocation6 + $0xa0] ss:$16 sps:$4 sm:$0xff]   ;;  %v2054_v18 = vld [vmem:[#allocation6 + $0xc4] ss:$16 sps:$4 sm:$0xff]   ;;  %v2072_v19 = vld [vmem:[#allocation6 + $0x48] ss:$16 sps:$4 sm:$0xff]  }
  0x3e   :  { %350 = vmatpush1.bf16.msra.mxu0 %v2041_v4  ;;  %v2073_v20 = vld [vmem:[#allocation6 + $0x6c] ss:$16 sps:$4 sm:$0xff]   ;;  %v2056_v21 = vld [vmem:[#allocation6 + $0xc0] ss:$16 sps:$4 sm:$0xff]   ;;  %v2057_v22 = vld [vmem:[#allocation6 + $0xe4] ss:$16 sps:$4 sm:$0xff]  }
  0x3f   :  { %351 = vmatprep.subr.bf16.mxu0 %v2042_v5  ;;  %463 = vmatpush1.bf16.msra.mxu1 %v2068_v15  ;;  %v2075_v23 = vld [vmem:[#allocation6 + $0x68] ss:$16 sps:$4 sm:$0xff]   ;;  %v2077_v24 = vld [vmem:[#allocation6 + $0x8c] ss:$16 sps:$4 sm:$0xff]   ;;  %v2059_v25 = vld [vmem:[#allocation6 + $0xe0] ss:$16 sps:$4 sm:$0xff]  }
  0x40   :  { %464 = vmatprep.subr.bf16.mxu1 %v2070_v16  ;;  %v2060_v26 = vld [vmem:[#allocation3] sm:$0xff]   ;;  %v2079_v27 = vld [vmem:[#allocation6 + $0x88] ss:$16 sps:$4 sm:$0xff]   ;;  %v2080_v28 = vld [vmem:[#allocation6 + $0xac] ss:$16 sps:$4 sm:$0xff]   ;;  %v2329_v60 = vshrl.u32 %v119_v59, 7 }
  0x41   :  { %v2093_v29 = vld [vmem:[#allocation8] sm:$0xff]   ;;  %v2082_v30 = vld [vmem:[#allocation6 + $0xa8] ss:$16 sps:$4 sm:$0xff]   ;;  %v2084_v32 = vld [vmem:[#allocation6 + $0xcc] ss:$16 sps:$4 sm:$0xff]  }
  0x42   :  { %352 = vmatpush1.bf16.msra.mxu0 %v2044_v6  ;;  %v2061_v33 = vld [vmem:[#allocation3 + $0x8] sm:$0xff]   ;;  %v2096_v34 = vld [vmem:[#allocation8 + $0x10] sm:$0xff]   ;;  %v2098_v37 = vld [vmem:[#allocation8 + $0x18] sm:$0xff]   ;;  %v121_v61 = vsub.s32 0, %v2329_v60  ;;  %v125_v63 = vsub.s32 1, %v2329_v60  ;;  %v129_v15 = vsub.s32 2, %v2329_v60 }
  0x43   :  { %353 = vmatprep.subr.bf16.mxu0 %v2045_v7  ;;  %465 = vmatpush1.bf16.msra.mxu1 %v2072_v19  ;;  %v2086_v35 = vld [vmem:[#allocation6 + $0xc8] ss:$16 sps:$4 sm:$0xff]   ;;  %v2087_v36 = vld [vmem:[#allocation6 + $0xec] ss:$16 sps:$4 sm:$0xff]   ;;  %v2092_v39 = vld [vmem:[#allocation8 + $0x40] sm:$0xff]  }
  0x44   :  { %466 = vmatprep.subr.bf16.mxu1 %v2073_v20  ;;  %v2089_v38 = vld [vmem:[#allocation6 + $0xe8] ss:$16 sps:$4 sm:$0xff]   ;;  %v2062_v40 = vld [vmem:[#allocation3 + $0x10] sm:$0xff]   ;;  %v2076_v45 = vld [vmem:[#allocation3 + $0x20] sm:$0xff]  }
  0x45   :  { %v2094_v41 = vld [vmem:[#allocation8 + $0x48] sm:$0xff]   ;;  %v2097_v42 = vld [vmem:[#allocation8 + $0x50] sm:$0xff]   ;;  %v2069_v43 = vld [vmem:[#allocation3 + $0x18] sm:$0xff]  }
  0x46   :  { %354 = vmatpush1.bf16.msra.mxu0 %v2047_v8  ;;  %v2099_v44 = vld [vmem:[#allocation8 + $0x58] sm:$0xff]   ;;  %v2083_v46 = vld [vmem:[#allocation3 + $0x28] sm:$0xff]   ;;  %v2090_v47 = vld [vmem:[#allocation3 + $0x30] sm:$0xff]  }
  0x47   :  { %355 = vmatprep.subr.bf16.mxu0 %v2048_v9  ;;  %467 = vmatpush1.bf16.msra.mxu1 %v2075_v23  ;;  %v2091_v48 = vld [vmem:[#allocation3 + $0x38] sm:$0xff]   ;;  %v2100_v49 = vld [vmem:[#allocation8 + $0x20] sm:$0xff]   ;;  %v2102_v51 = vld [vmem:[#allocation8 + $0x28] sm:$0xff]  }
  0x48   :  { %468 = vmatprep.subr.bf16.mxu1 %v2077_v24  ;;  %v2101_v50 = vld [vmem:[#allocation8 + $0x60] sm:$0xff]   ;;  %v2103_v52 = vld [vmem:[#allocation8 + $0x68] sm:$0xff]   ;;  %v2104_v53 = vld [vmem:[#allocation8 + $0x30] sm:$0xff]  }
  0x49   :  { %v2105_v54 = vld [vmem:[#allocation8 + $0x70] sm:$0xff]   ;;  %v2106_v55 = vld [vmem:[#allocation8 + $0x38] sm:$0xff]   ;;  %v2108_v57 = vld [vmem:[#allocation8 + $0x80] sm:$0xff]  }
  0x4a   :  { %356 = vmatpush1.bf16.msra.mxu0 %v2050_v10  ;;  %v2107_v56 = vld [vmem:[#allocation8 + $0x78] sm:$0xff]   ;;  %v2326_v58 = vld [vmem:[#allocation8 + $0xc0] sm:$0xff]  }
  0x4b   :  { %357 = vmatprep.subr.bf16.mxu0 %v2051_v14  ;;  %469 = vmatpush1.bf16.msra.mxu1 %v2079_v27  ;;  %v117_v62 = vld [vmem:[%s2572_s2] sm:$0xf] }
  0x4c   :  { %470 = vmatprep.subr.bf16.mxu1 %v2080_v28  ;;  %v2342_v1 = vrot.slane %v117_v62, %v125_v63 }
  0x4e   :  { %358 = vmatpush1.bf16.msra.mxu0 %v2053_v17 }
  0x4f   :  { %359 = vmatprep.subr.bf16.mxu0 %v2054_v18  ;;  %471 = vmatpush1.bf16.msra.mxu1 %v2082_v30  ;;  %v133_v18 = vsub.s32 3, %v2329_v60 }
  0x50   :  { %472 = vmatprep.subr.bf16.mxu1 %v2084_v32 }
  0x51   :  { %v2360_v27 = vrot.slane %v117_v62, %v133_v18 }
  0x52   :  { %360 = vmatpush1.bf16.msra.mxu0 %v2056_v21 }
  0x53   :  { %361 = vmatprep.subr.bf16.mxu0 %v2057_v22  ;;  %473 = vmatpush1.bf16.msra.mxu1 %v2086_v35 }
  0x54   :  { %474 = vmatprep.subr.bf16.mxu1 %v2087_v36 }
  0x56   :  { %362 = vmatpush1.bf16.msra.mxu0 %v2059_v25  ;;  %v2355_v25 = vrot.slane %v117_v62, %v129_v15 }
  0x57   :  { %1895 = vmatprep.subr.bf16.mxu0 %v2093_v29  ;;  %475 = vmatpush1.bf16.msra.mxu1 %v2089_v38 }
  0x58   :  { %1927 = vmatprep.subr.bf16.mxu1 %v2092_v39 }
  0x59   :  { %380 = vmatmul.mubr.bf16.vlgmr.msra.gmra.mrb[0].mxu0 %v2060_v26 }
  0x5a   :  { %389 = vmatprep.mubr.bf16.mxu0 %v2230_v0  ;;  %1896 = vmatpush3.bf16.msra.mxu0 %v2093_v29 }
  0x5b   :  { %1897 = vmatprep.subr.bf16.mxu0 %v2095_v31  ;;  %493 = vmatmul.mubr.bf16.vlgmr.msra.gmra.mrb[0].mxu1 %v2060_v26 }
  0x5c   :  { %502 = vmatprep.mubr.bf16.mxu1 %v2230_v0  ;;  %1928 = vmatpush3.bf16.msra.mxu1 %v2092_v39  ;;  %v2111_v39 = vld [vmem:[#allocation8 + $0xc8] sm:$0xff]  }
  0x5d   :  { %1929 = vmatprep.subr.bf16.mxu1 %v2094_v41 }
  0x5e   :  { %1898 = vmatpush3.bf16.msra.mxu0 %v2095_v31 }
  0x5f   :  { %1899 = vmatprep.subr.bf16.mxu0 %v2096_v34 }
  0x60   :  { %1930 = vmatpush3.bf16.msra.mxu1 %v2094_v41 }
  0x61   :  { %390 = vmatmul.mubr.bf16.gmra.mrb[4].mxu0 %v2061_v33  ;;  %1931 = vmatprep.subr.bf16.mxu1 %v2097_v42 }
  0x62   :  { %399 = vmatprep.mubr.bf16.mxu0 %v2230_v0  ;;  %1900 = vmatpush3.bf16.msra.mxu0 %v2096_v34  ;;  %v2110_v34 = vld [vmem:[#allocation8 + $0x88] sm:$0xff]  }
  0x63   :  { %1901 = vmatprep.subr.bf16.mxu0 %v2098_v37  ;;  %503 = vmatmul.mubr.bf16.gmra.mrb[4].mxu1 %v2061_v33 }
  0x64   :  { %512 = vmatprep.mubr.bf16.mxu1 %v2230_v0  ;;  %1932 = vmatpush3.bf16.msra.mxu1 %v2097_v42 }
  0x65   :  { %1933 = vmatprep.subr.bf16.mxu1 %v2099_v44 }
  0x66   :  { %1902 = vmatpush3.bf16.msra.mxu0 %v2098_v37 }
  0x67   :  { %1903 = vmatprep.subr.bf16.mxu0 %v2100_v49 }
  0x68   :  { %1934 = vmatpush3.bf16.msra.mxu1 %v2099_v44 }
  0x69   :  { %400 = vmatmul.mubr.bf16.gmra.mrb[8].mxu0 %v2062_v40  ;;  %1935 = vmatprep.subr.bf16.mxu1 %v2101_v50 }
  0x6a   :  { %409 = vmatprep.mubr.bf16.mxu0 %v2230_v0  ;;  %1904 = vmatpush3.bf16.msra.mxu0 %v2100_v49 }
  0x6b   :  { %513 = vmatmul.mubr.bf16.gmra.mrb[8].mxu1 %v2062_v40  ;;  %1905 = vmatprep.subr.bf16.mxu0 %v2102_v51 }
  0x6c   :  { %522 = vmatprep.mubr.bf16.mxu1 %v2230_v0  ;;  %1936 = vmatpush3.bf16.msra.mxu1 %v2101_v50 }
  0x6d   :  { %1937 = vmatprep.subr.bf16.mxu1 %v2103_v52 }
  0x6e   :  { %1906 = vmatpush3.bf16.msra.mxu0 %v2102_v51 }
  0x6f   :  { %1907 = vmatprep.subr.bf16.mxu0 %v2104_v53 }
  0x70   :  { %1938 = vmatpush3.bf16.msra.mxu1 %v2103_v52 }
  0x71   :  { %410 = vmatmul.mubr.bf16.gmra.mrb[12].mxu0 %v2069_v43  ;;  %1939 = vmatprep.subr.bf16.mxu1 %v2105_v54 }
  0x72   :  { %419 = vmatprep.mubr.bf16.mxu0 %v2230_v0  ;;  %1908 = vmatpush3.bf16.msra.mxu0 %v2104_v53  ;;  %v2112_v53 = vld [vmem:[#allocation8 + $0x90] sm:$0xff]  }
  0x73   :  { %523 = vmatmul.mubr.bf16.gmra.mrb[12].mxu1 %v2069_v43  ;;  %1909 = vmatprep.subr.bf16.mxu0 %v2106_v55 }
  0x74   :  { %532 = vmatprep.mubr.bf16.mxu1 %v2230_v0  ;;  %1940 = vmatpush3.bf16.msra.mxu1 %v2105_v54 }
  0x75   :  { %1941 = vmatprep.subr.bf16.mxu1 %v2107_v56 }
  0x76   :  { %1910 = vmatpush3.bf16.msra.mxu0 %v2106_v55 }
  0x77   :  { %1959 = vmatprep.subr.bf16.mxu0 %v2108_v57 }
  0x78   :  { %1942 = vmatpush3.bf16.msra.mxu1 %v2107_v56  ;;  %v2113_v56 = vld [vmem:[#allocation8 + $0xd0] sm:$0xff]  }
  0x79   :  { %420 = vmatmul.mubr.bf16.gmra.mrb[16].mxu0 %v2076_v45  ;;  %1991 = vmatprep.subr.bf16.mxu1 %v2326_v58 }
  0x7a   :  { %429 = vmatprep.mubr.bf16.mxu0 %v2230_v0 }
  0x7b   :  { %533 = vmatmul.mubr.bf16.gmra.mrb[16].mxu1 %v2076_v45 }
  0x7c   :  { %542 = vmatprep.mubr.bf16.mxu1 %v2230_v0 }
  0x81   :  { %430 = vmatmul.mubr.bf16.gmra.mrb[20].mxu0 %v2083_v46 }
  0x82   :  { %439 = vmatprep.mubr.bf16.mxu0 %v2230_v0 }
  0x83   :  { %543 = vmatmul.mubr.bf16.gmra.mrb[20].mxu1 %v2083_v46 }
  0x84   :  { %552 = vmatprep.mubr.bf16.mxu1 %v2230_v0 }
  0x89   :  { %440 = vmatmul.mubr.bf16.gmra.mrb[24].mxu0 %v2090_v47 }
  0x8a   :  { %449 = vmatprep.mubr.bf16.mxu0 %v2230_v0 }
  0x8b   :  { %553 = vmatmul.mubr.bf16.gmra.mrb[24].mxu1 %v2090_v47 }
  0x8c   :  { %562 = vmatprep.mubr.bf16.mxu1 %v2230_v0  ;;  %v2338_v0 = vrot.slane %v117_v62, %v121_v61 }
  0x91   :  { %450 = vmatmul.mubr.bf16.gmra.mrb[28].mxu0 %v2091_v48 }
  0x93   :  { %563 = vmatmul.mubr.bf16.gmra.mrb[28].mxu1 %v2091_v48 }
 0x12c   :  { %v381_v2 = vpop.f32.mrb[0].mxu0 }
 0x12d   :  { %v382_v3 = vadd.f32 %v381_v2, %v2338_v0  ;;  %v383_v4 = vpop.f32.mrb[1].mxu0 }
 0x12e   :  { %v384_v5 = vadd.f32 %v383_v4, %v2342_v1  ;;  %v385_v6 = vpop.f32.mrb[2].mxu0  ;;  %v494_v32 = vpop.f32.mrb[0].mxu1 }
 0x12f   :  { %v386_v7 = vadd.f32 %v385_v6, %v2338_v0  ;;  %v387_v8 = vpop.f32.mrb[3].mxu0  ;;  %v573_v10 = vmax.f32 %v382_v3, 0.0  ;;  %v495_v35 = vadd.f32 %v494_v32, %v2355_v25  ;;  %v496_v36 = vpop.f32.mrb[1].mxu1 }
 0x130   :  { %v388_v9 = vadd.f32 %v387_v8, %v2342_v1  ;;  %v574_v12 = vmax.f32 %v384_v5, 0.0  ;;  %v497_v40 = vadd.f32 %v496_v36, %v2360_v27  ;;  %v498_v41 = vpop.f32.mrb[2].mxu1 }
 0x131   :  { %v577_v11 = vmax.f32 %v386_v7, 0.0  ;;  %v575_v44 = vmax.f32 %v495_v35, 0.0  ;;  %v499_v45 = vadd.f32 %v498_v41, %v2355_v25  ;;  %v500_v46 = vpop.f32.mrb[3].mxu1 }
 0x132   :  { %v578_v13 = vmax.f32 %v388_v9, 0.0  ;;  %v576_v49 = vmax.f32 %v497_v40, 0.0  ;;  %v501_v50 = vadd.f32 %v500_v46, %v2360_v27 }
 0x133   :  { %v637_v14 = vpack.c.bf16 %v577_v11, %v573_v10  ;;  %v579_v54 = vmax.f32 %v499_v45, 0.0 }
 0x134   :  { %v638_v16 = vpack.c.bf16 %v578_v13, %v574_v12  ;;  %v391_v17 = vpop.f32.mrb[4].mxu0  ;;  %v580_v59 = vmax.f32 %v501_v50, 0.0  ;;  %v2115_v12 = vld [vmem:[#allocation8 + $0xd8] sm:$0xff]  }
 0x135   :  { %v392_v19 = vadd.f32 %v391_v17, %v2338_v0  ;;  %v393_v20 = vpop.f32.mrb[5].mxu0  ;;  %1911 = vmatprep.mubr.bf16.mxu0 %v637_v14  ;;  %v2371_v3 = vpack.c.bf16 %v579_v54, %v575_v44 }
 0x136   :  { %v394_v21 = vadd.f32 %v393_v20, %v2342_v1  ;;  %v395_v22 = vpop.f32.mrb[6].mxu0  ;;  %1943 = vmatprep.mubr.bf16.mxu1 %v638_v16  ;;  %v2373_v5 = vpack.c.bf16 %v580_v59, %v576_v49  ;;  %v504_v6 = vpop.f32.mrb[4].mxu1 }
 0x137   :  { %v396_v23 = vadd.f32 %v395_v22, %v2338_v0  ;;  %v397_v24 = vpop.f32.mrb[7].mxu0  ;;  %v581_v28 = vmax.f32 %v392_v19, 0.0  ;;  %v505_v8 = vadd.f32 %v504_v6, %v2355_v25  ;;  %v506_v9 = vpop.f32.mrb[5].mxu1  ;;  %v2120_v6 = vld [vmem:[#allocation8 + $0xb0] sm:$0xff]  }
 0x138   :  { %v398_v26 = vadd.f32 %v397_v24, %v2342_v1  ;;  %v582_v30 = vmax.f32 %v394_v21, 0.0  ;;  %v507_v13 = vadd.f32 %v506_v9, %v2360_v27  ;;  %v508_v14 = vpop.f32.mrb[6].mxu1 }
 0x139   :  { %v585_v29 = vmax.f32 %v396_v23, 0.0  ;;  %v583_v19 = vmax.f32 %v505_v8, 0.0  ;;  %v509_v20 = vadd.f32 %v508_v14, %v2355_v25  ;;  %v510_v21 = vpop.f32.mrb[7].mxu1  ;;  %v2121_v8 = vld [vmem:[#allocation8 + $0xf0] sm:$0xff]  }
 0x13a   :  { %v586_v31 = vmax.f32 %v398_v26, 0.0  ;;  %v584_v24 = vmax.f32 %v507_v13, 0.0  ;;  %v511_v26 = vadd.f32 %v510_v21, %v2360_v27 }
 0x13b   :  { %v641_v33 = vpack.c.bf16 %v585_v29, %v581_v28 }
 0x13c   :  { %v642_v37 = vpack.c.bf16 %v586_v31, %v582_v30  ;;  %v401_v38 = vpop.f32.mrb[8].mxu0  ;;  %v2116_v30 = vld [vmem:[#allocation8 + $0xa0] sm:$0xff]   ;;  %v587_v31 = vmax.f32 %v509_v20, 0.0  ;;  %v2122_v20 = vld [vmem:[#allocation8 + $0xb8] sm:$0xff]  }
 0x13d   :  { %v402_v42 = vadd.f32 %v401_v38, %v2338_v0  ;;  %v403_v43 = vpop.f32.mrb[9].mxu0  ;;  %1912 = vmatmul.mubr.bf16.vlgmr.msra.gmra.mrb[32].mxu0 %v641_v33  ;;  %v2117_v33 = vld [vmem:[#allocation8 + $0xe0] sm:$0xff]  }
 0x13e   :  { %v404_v47 = vadd.f32 %v403_v43, %v2342_v1  ;;  %v405_v48 = vpop.f32.mrb[10].mxu0  ;;  %1944 = vmatmul.mubr.bf16.vlgmr.msra.gmra.mrb[32].mxu1 %v642_v37  ;;  %1960 = vmatpush3.bf16.msra.mxu0 %v2108_v57  ;;  %v2383_v37 = vpack.c.bf16 %v587_v31, %v583_v19  ;;  %v514_v41 = vpop.f32.mrb[8].mxu1  ;;  %v2118_v43 = vld [vmem:[#allocation8 + $0xa8] sm:$0xff]  }
 0x13f   :  { %v406_v51 = vadd.f32 %v405_v48, %v2338_v0  ;;  %v407_v52 = vpop.f32.mrb[11].mxu0  ;;  %1992 = vmatpush3.bf16.msra.mxu1 %v2326_v58  ;;  %1961 = vmatprep.subr.bf16.mxu0 %v2110_v34  ;;  %v589_v62 = vmax.f32 %v402_v42, 0.0  ;;  %v2114_v58 = vld [vmem:[#allocation8 + $0x98] sm:$0xff]   ;;  %v515_v44 = vadd.f32 %v514_v41, %v2355_v25  ;;  %v516_v45 = vpop.f32.mrb[9].mxu1  ;;  %v2119_v48 = vld [vmem:[#allocation8 + $0xe8] sm:$0xff]  }
 0x140   :  { %v408_v55 = vadd.f32 %v407_v52, %v2342_v1  ;;  %1993 = vmatprep.subr.bf16.mxu1 %v2111_v39  ;;  %v590_v57 = vmax.f32 %v404_v47, 0.0  ;;  %v517_v49 = vadd.f32 %v516_v45, %v2360_v27  ;;  %v518_v50 = vpop.f32.mrb[10].mxu1 }
 0x141   :  { %v593_v2 = vmax.f32 %v406_v51, 0.0  ;;  %v519_v54 = vadd.f32 %v518_v50, %v2355_v25 }
 0x142   :  { %v594_v4 = vmax.f32 %v408_v55, 0.0  ;;  %1962 = vmatpush3.bf16.msra.mxu0 %v2110_v34  ;;  %v588_v34 = vmax.f32 %v511_v26, 0.0  ;;  %v520_v55 = vpop.f32.mrb[11].mxu1  ;;  %v2123_v26 = vld [vmem:[#allocation8 + $0xf8] sm:$0xff]  }
 0x143   :  { %v645_v7 = vpack.c.bf16 %v593_v2, %v589_v62  ;;  %1994 = vmatpush3.bf16.msra.mxu1 %v2111_v39  ;;  %1963 = vmatprep.subr.bf16.mxu0 %v2112_v53  ;;  %v592_v62 = vmax.f32 %v517_v49, 0.0  ;;  %v521_v2 = vadd.f32 %v520_v55, %v2360_v27 }
 0x144   :  { %v646_v10 = vpack.c.bf16 %v594_v4, %v590_v57  ;;  %v411_v11 = vpop.f32.mrb[12].mxu0  ;;  %1995 = vmatprep.subr.bf16.mxu1 %v2113_v56  ;;  %v2385_v40 = vpack.c.bf16 %v588_v34, %v584_v24 }
 0x145   :  { %v412_v16 = vadd.f32 %v411_v11, %v2338_v0  ;;  %v413_v17 = vpop.f32.mrb[13].mxu0  ;;  %1915 = vmatprep.mubr.bf16.mxu0 %v645_v7  ;;  %v595_v7 = vmax.f32 %v519_v54, 0.0  ;;  %v596_v9 = vmax.f32 %v521_v2, 0.0 }
 0x146   :  { %v414_v22 = vadd.f32 %v413_v17, %v2342_v1  ;;  %v415_v23 = vpop.f32.mrb[14].mxu0  ;;  %1947 = vmatprep.mubr.bf16.mxu1 %v646_v10  ;;  %1964 = vmatpush3.bf16.msra.mxu0 %v2112_v53  ;;  %v591_v53 = vmax.f32 %v515_v44, 0.0  ;;  %v524_v17 = vpop.f32.mrb[12].mxu1 }
 0x147   :  { %v416_v28 = vadd.f32 %v415_v23, %v2338_v0  ;;  %v417_v29 = vpop.f32.mrb[15].mxu0  ;;  %1996 = vmatpush3.bf16.msra.mxu1 %v2113_v56  ;;  %1965 = vmatprep.subr.bf16.mxu0 %v2114_v58  ;;  %v597_v35 = vmax.f32 %v412_v16, 0.0  ;;  %v2397_v16 = vpack.c.bf16 %v596_v9, %v592_v62  ;;  %v525_v21 = vadd.f32 %v524_v17, %v2355_v25 }
 0x148   :  { %v418_v32 = vadd.f32 %v417_v29, %v2342_v1  ;;  %1997 = vmatprep.subr.bf16.mxu1 %v2115_v12  ;;  %v598_v38 = vmax.f32 %v414_v22, 0.0  ;;  %v526_v22 = vpop.f32.mrb[13].mxu1 }
 0x149   :  { %v601_v36 = vmax.f32 %v416_v28, 0.0  ;;  %v527_v28 = vadd.f32 %v526_v22, %v2360_v27  ;;  %v528_v29 = vpop.f32.mrb[14].mxu1 }
 0x14a   :  { %v602_v39 = vmax.f32 %v418_v32, 0.0  ;;  %1966 = vmatpush3.bf16.msra.mxu0 %v2114_v58  ;;  %v599_v32 = vmax.f32 %v525_v21, 0.0  ;;  %v530_v34 = vpop.f32.mrb[15].mxu1 }
 0x14b   :  { %v649_v42 = vpack.c.bf16 %v601_v36, %v597_v35  ;;  %1998 = vmatpush3.bf16.msra.mxu1 %v2115_v12  ;;  %1967 = vmatprep.subr.bf16.mxu0 %v2116_v30  ;;  %v2395_v12 = vpack.c.bf16 %v595_v7, %v591_v53 }
 0x14c   :  { %v650_v46 = vpack.c.bf16 %v602_v39, %v598_v38  ;;  %v421_v47 = vpop.f32.mrb[16].mxu0  ;;  %1999 = vmatprep.subr.bf16.mxu1 %v2117_v33  ;;  %v600_v38 = vmax.f32 %v527_v28, 0.0  ;;  %v531_v39 = vadd.f32 %v530_v34, %v2360_v27 }
 0x14d   :  { %v422_v51 = vadd.f32 %v421_v47, %v2338_v0  ;;  %v423_v52 = vpop.f32.mrb[17].mxu0  ;;  %1916 = vmatmul.mubr.bf16.gmra.mrb[36].mxu0 %v649_v42 }
 0x14e   :  { %v424_v56 = vadd.f32 %v423_v52, %v2342_v1  ;;  %v425_v59 = vpop.f32.mrb[18].mxu0  ;;  %1948 = vmatmul.mubr.bf16.gmra.mrb[36].mxu1 %v650_v46  ;;  %1968 = vmatpush3.bf16.msra.mxu0 %v2116_v30  ;;  %v604_v45 = vmax.f32 %v531_v39, 0.0  ;;  %v534_v52 = vpop.f32.mrb[16].mxu1 }
 0x14f   :  { %v426_v57 = vadd.f32 %v425_v59, %v2338_v0  ;;  %v427_v4 = vpop.f32.mrb[19].mxu0  ;;  %2000 = vmatpush3.bf16.msra.mxu1 %v2117_v33  ;;  %1969 = vmatprep.subr.bf16.mxu0 %v2118_v43  ;;  %v605_v10 = vmax.f32 %v422_v51, 0.0  ;;  %v529_v33 = vadd.f32 %v528_v29, %v2355_v25  ;;  %v535_v54 = vadd.f32 %v534_v52, %v2355_v25  ;;  %v536_v55 = vpop.f32.mrb[17].mxu1 }
 0x150   :  { %v428_v58 = vadd.f32 %v427_v4, %v2342_v1  ;;  %2001 = vmatprep.subr.bf16.mxu1 %v2119_v48  ;;  %v606_v13 = vmax.f32 %v424_v56, 0.0  ;;  %v2409_v51 = vpack.c.bf16 %v604_v45, %v600_v38  ;;  %v537_v62 = vadd.f32 %v536_v55, %v2360_v27  ;;  %v538_v2 = vpop.f32.mrb[18].mxu1 }
 0x151   :  { %v609_v11 = vmax.f32 %v426_v57, 0.0  ;;  %v539_v7 = vadd.f32 %v538_v2, %v2355_v25 }
 0x152   :  { %v610_v14 = vmax.f32 %v428_v58, 0.0  ;;  %1970 = vmatpush3.bf16.msra.mxu0 %v2118_v43  ;;  %v603_v43 = vmax.f32 %v529_v33, 0.0  ;;  %v540_v58 = vpop.f32.mrb[19].mxu1 }
 0x153   :  { %v653_v19 = vpack.c.bf16 %v609_v11, %v605_v10  ;;  %2002 = vmatpush3.bf16.msra.mxu1 %v2119_v48  ;;  %1971 = vmatprep.subr.bf16.mxu0 %v2120_v6  ;;  %v608_v10 = vmax.f32 %v537_v62, 0.0  ;;  %v541_v11 = vadd.f32 %v540_v58, %v2360_v27  ;;  %v611_v17 = vmax.f32 %v539_v7, 0.0 }
 0x154   :  { %v654_v23 = vpack.c.bf16 %v610_v14, %v606_v13  ;;  %v431_v24 = vpop.f32.mrb[20].mxu0  ;;  %2003 = vmatprep.subr.bf16.mxu1 %v2121_v8  ;;  %v2407_v48 = vpack.c.bf16 %v603_v43, %v599_v32 }
 0x155   :  { %v432_v30 = vadd.f32 %v431_v24, %v2338_v0  ;;  %v433_v31 = vpop.f32.mrb[21].mxu0  ;;  %1919 = vmatprep.mubr.bf16.mxu0 %v653_v19 }
 0x156   :  { %v434_v35 = vadd.f32 %v433_v31, %v2342_v1  ;;  %v435_v36 = vpop.f32.mrb[22].mxu0  ;;  %1951 = vmatprep.mubr.bf16.mxu1 %v654_v23  ;;  %1972 = vmatpush3.bf16.msra.mxu0 %v2120_v6  ;;  %v607_v6 = vmax.f32 %v535_v54, 0.0  ;;  %v544_v29 = vpop.f32.mrb[20].mxu1 }
 0x157   :  { %v436_v41 = vadd.f32 %v435_v36, %v2338_v0  ;;  %v437_v42 = vpop.f32.mrb[23].mxu0  ;;  %2004 = vmatpush3.bf16.msra.mxu1 %v2121_v8  ;;  %1973 = vmatprep.subr.bf16.mxu0 %v2122_v20  ;;  %v613_v46 = vmax.f32 %v432_v30, 0.0  ;;  %v545_v31 = vadd.f32 %v544_v29, %v2355_v25  ;;  %v546_v32 = vpop.f32.mrb[21].mxu1 }
 0x158   :  { %v438_v44 = vadd.f32 %v437_v42, %v2342_v1  ;;  %2005 = vmatprep.subr.bf16.mxu1 %v2123_v26  ;;  %v614_v49 = vmax.f32 %v434_v35, 0.0  ;;  %v2419_v23 = vpack.c.bf16 %v611_v17, %v607_v6  ;;  %v547_v35 = vadd.f32 %v546_v32, %v2360_v27  ;;  %v548_v36 = vpop.f32.mrb[22].mxu1 }
 0x159   :  { %v617_v47 = vmax.f32 %v436_v41, 0.0  ;;  %v615_v41 = vmax.f32 %v545_v31, 0.0  ;;  %v549_v42 = vadd.f32 %v548_v36, %v2355_v25  ;;  %v550_v43 = vpop.f32.mrb[23].mxu1 }
 0x15a   :  { %v618_v50 = vmax.f32 %v438_v44, 0.0  ;;  %1974 = vmatpush3.bf16.msra.mxu0 %v2122_v20  ;;  %v612_v20 = vmax.f32 %v541_v11, 0.0 }
 0x15b   :  { %v657_v53 = vpack.c.bf16 %v617_v47, %v613_v46  ;;  %2006 = vmatpush3.bf16.msra.mxu1 %v2123_v26  ;;  %v616_v46 = vmax.f32 %v547_v35, 0.0  ;;  %v551_v47 = vadd.f32 %v550_v43, %v2360_v27  ;;  %v619_v52 = vmax.f32 %v549_v42, 0.0 }
 0x15c   :  { %v658_v56 = vpack.c.bf16 %v618_v50, %v614_v49  ;;  %v441_v59 = vpop.f32.mrb[24].mxu0  ;;  %v2421_v28 = vpack.c.bf16 %v612_v20, %v608_v10 }
 0x15d   :  { %v442_v57 = vadd.f32 %v441_v59, %v2338_v0  ;;  %v443_v4 = vpop.f32.mrb[25].mxu0  ;;  %1920 = vmatmul.mubr.bf16.gmra.mrb[40].mxu0 %v657_v53  ;;  %v620_v54 = vmax.f32 %v551_v47, 0.0  ;;  %v659_v59 = vpack.c.bf16 %v619_v52, %v615_v41 }
 0x15e   :  { %v444_v8 = vadd.f32 %v443_v4, %v2342_v1  ;;  %v445_v9 = vpop.f32.mrb[26].mxu0  ;;  %1952 = vmatmul.mubr.bf16.gmra.mrb[40].mxu1 %v658_v56  ;;  %v554_v4 = vpop.f32.mrb[24].mxu1 }
 0x15f   :  { %v446_v13 = vadd.f32 %v445_v9, %v2338_v0  ;;  %v447_v14 = vpop.f32.mrb[27].mxu0  ;;  %v621_v21 = vmax.f32 %v442_v57, 0.0  ;;  %v660_v57 = vpack.c.bf16 %v620_v54, %v616_v46  ;;  %v555_v7 = vadd.f32 %v554_v4, %v2355_v25  ;;  %v556_v58 = vpop.f32.mrb[25].mxu1 }
 0x160   :  { %v448_v19 = vadd.f32 %v447_v14, %v2342_v1  ;;  %v622_v24 = vmax.f32 %v444_v8, 0.0  ;;  %v557_v9 = vadd.f32 %v556_v58, %v2360_v27 }
 0x161   :  { %v625_v22 = vmax.f32 %v446_v13, 0.0  ;;  %v623_v10 = vmax.f32 %v555_v7, 0.0 }
 0x162   :  { %v626_v26 = vmax.f32 %v448_v19, 0.0  ;;  %v624_v13 = vmax.f32 %v557_v9, 0.0 }
 0x163   :  { %v661_v30 = vpack.c.bf16 %v625_v22, %v621_v21 }
 0x164   :  { %v662_v33 = vpack.c.bf16 %v626_v26, %v622_v24  ;;  %v451_v34 = vpop.f32.mrb[28].mxu0 }
 0x165   :  { %v452_v38 = vadd.f32 %v451_v34, %v2338_v0  ;;  %v453_v39 = vpop.f32.mrb[29].mxu0  ;;  %1923 = vmatprep.mubr.bf16.mxu0 %v661_v30 }
 0x166   :  { %v454_v44 = vadd.f32 %v453_v39, %v2342_v1  ;;  %v455_v45 = vpop.f32.mrb[30].mxu0  ;;  %1955 = vmatprep.mubr.bf16.mxu1 %v662_v33 }
 0x167   :  { %v456_v49 = vadd.f32 %v455_v45, %v2338_v0  ;;  %v457_v50 = vpop.f32.mrb[31].mxu0  ;;  %v629_v55 = vmax.f32 %v452_v38, 0.0  ;;  %v558_v0 = vpop.f32.mrb[26].mxu1 }
 0x168   :  { %v458_v53 = vadd.f32 %v457_v50, %v2342_v1  ;;  %v630_v62 = vmax.f32 %v454_v44, 0.0  ;;  %v559_v1 = vadd.f32 %v558_v0, %v2355_v25  ;;  %v560_v11 = vpop.f32.mrb[27].mxu1 }
 0x169   :  { %v633_v56 = vmax.f32 %v456_v49, 0.0  ;;  %v561_v14 = vadd.f32 %v560_v11, %v2360_v27  ;;  %v564_v22 = vpop.f32.mrb[28].mxu1 }
 0x16a   :  { %v634_v2 = vmax.f32 %v458_v53, 0.0  ;;  %v627_v17 = vmax.f32 %v559_v1, 0.0  ;;  %v565_v24 = vadd.f32 %v564_v22, %v2355_v25  ;;  %v566_v26 = vpop.f32.mrb[29].mxu1 }
 0x16b   :  { %v665_v6 = vpack.c.bf16 %v633_v56, %v629_v55  ;;  %v628_v19 = vmax.f32 %v561_v14, 0.0  ;;  %v567_v29 = vadd.f32 %v566_v26, %v2360_v27  ;;  %v568_v30 = vpop.f32.mrb[30].mxu1  ;;  %v1627_v55 = vld [vmem:[%s2576_s6] sm:$0xf]  ;;  %s2232_s6 = smov [#allocation9]  }
 0x16c   :  { %v666_v8 = vpack.c.bf16 %v634_v2, %v630_v62  ;;  %v663_v20 = vpack.c.bf16 %v627_v17, %v623_v10  ;;  %v631_v31 = vmax.f32 %v565_v24, 0.0  ;;  %v570_v32 = vpop.f32.mrb[31].mxu1  ;;  %1630 = vperm.xlu0 %2035, %v1627_v55   ;;  %s1748_s20 = sshll.u32 %s2232_s6, 4  ;;  %s1749_s20 = int_to_ptr.vmem [resolvable:$true] %s1748_s20 }
 0x16d   :  { %1924 = vmatmul.mubr.bf16.gmra.mrb[44].mxu0 %v665_v6  ;;  %v664_v21 = vpack.c.bf16 %v628_v19, %v624_v13  ;;  %v571_v33 = vadd.f32 %v570_v32, %v2360_v27  ;;  %s2195_s21 = scalar_lea.vmem %s1749_s20, 64  ;;  %p2200_p11 = scmp.lt.s32.totalorder %s1749_s20, %s1749_s20 }
 0x16e   :  { %1956 = vmatmul.mubr.bf16.gmra.mrb[44].mxu1 %v666_v8  ;;  %1975 = vmatprep.mubr.bf16.mxu0 %v2371_v3  ;;  %v569_v3 = vadd.f32 %v568_v30, %v2355_v25  ;;  %v2231_v25 = vmov 1983009808   ;;  %p2196_p10 = scmp.ne.s32.totalorder %s1749_s20, %s2195_s21  ;;  %p2201_p12 = scmp.lt.s32.totalorder %s2195_s21, %s2195_s21 }
 0x16f   :  { %2007 = vmatprep.mubr.bf16.mxu1 %v2373_v5  ;;  %v632_v5 = vmax.f32 %v567_v29, 0.0  ;;  %v636_v35 = vmax.f32 %v571_v33, 0.0  ;;  %v1636_v27 = vunpack.c.l.s4 %v2231_v25 }
 0x170   :  { %v635_v34 = vmax.f32 %v569_v3, 0.0  ;;  %p2202_p13 = por %p2201_p12, %p2200_p11 }
 0x171   :  { %v668_v38 = vpack.c.bf16 %v636_v35, %v632_v5 }
 0x172   :  { %v667_v36 = vpack.c.bf16 %v635_v34, %v631_v31  ;;  %p2203_p0 = pnand %p2202_p13, %p2196_p10 }
 0x175   :  { %1976 = vmatmul.mubr.bf16.vlgmr.msra.gmra.mrb[48].mxu0 %v2383_v37  ;;  %v1637_v37 = vunpack.c.0.s8 %v1636_v27 }
 0x176   :  { %2008 = vmatmul.mubr.bf16.vlgmr.msra.gmra.mrb[48].mxu1 %v2385_v40  ;;  %1979 = vmatprep.mubr.bf16.mxu0 %v2395_v12  ;;  %v1626_v12 = vld [vmem:[%s2575_s5] sm:$0xff] }
 0x177   :  { %2011 = vmatprep.mubr.bf16.mxu1 %v2397_v16  ;;  %v1640_v40 = vsub.s32 %v1637_v37, %v2329_v60 }
 0x179   :  { %v2453_v16 = vrot.slane %v1626_v12, %v1640_v40 }
 0x17d   :  { %1980 = vmatmul.mubr.bf16.gmra.mrb[52].mxu0 %v2407_v48  ;;  %v2458_v48 = vld [vmem:[%s2574_s4] sm:$0xf] }
 0x17e   :  { %2012 = vmatmul.mubr.bf16.gmra.mrb[52].mxu1 %v2409_v51  ;;  %1983 = vmatprep.mubr.bf16.mxu0 %v2419_v23  ;;  %v1649_v51 = vcombine.high %v2453_v16, %v2453_v16  ;;  %v1634_v23 = vcombine.high %v1626_v12, %v1626_v12  ;;  %v2470_v39 = vrot.slane %v2458_v48, %v125_v63 }
 0x17f   :  { %2015 = vmatprep.mubr.bf16.mxu1 %v2421_v28  ;;  %v2465_v28 = vrot.slane %v2458_v48, %v121_v61 }
 0x180   :  { %v2472_v41 = vrot.slane %v1634_v23, %v1640_v40 }
 0x182   :  { %v1650_v43 = vcombine.high %v2472_v41, %v2472_v41 }
 0x185   :  { %1984 = vmatmul.mubr.bf16.gmra.mrb[56].mxu0 %v659_v59 }
 0x186   :  { %2016 = vmatmul.mubr.bf16.gmra.mrb[56].mxu1 %v660_v57  ;;  %1987 = vmatprep.mubr.bf16.mxu0 %v663_v20 }
 0x187   :  { %2019 = vmatprep.mubr.bf16.mxu1 %v664_v21 }
 0x18d   :  { %1988 = vmatmul.mubr.bf16.gmra.mrb[60].mxu0 %v667_v36 }
 0x18e   :  { %2020 = vmatmul.mubr.bf16.gmra.mrb[60].mxu1 %v668_v38  ;;  %1727 = vmatprep.mubr.bf16.mxu0 %v1650_v43 }
 0x18f   :  { %1687 = vmatprep.mubr.bf16.mxu1 %v1649_v51 }
 0x210   :  { %v1913_v42 = vpop.f32.mrb[32].mxu0 }
 0x211   :  { %v1474_v44 = vadd.f32 %v1913_v42, %v2465_v28  ;;  %v767_v45 = vpop.f32.mrb[33].mxu0  ;;  %v1945_v46 = vpop.f32.mrb[32].mxu1 }
 0x212   :  { %v1466_v47 = vadd.f32 %v2465_v28, %v767_v45  ;;  %v1475_v61 = vadd.f32 %v1945_v46, %v2470_v39  ;;  %v1914_v49 = vpop.f32.mrb[34].mxu0  ;;  %v945_v50 = vpop.f32.mrb[33].mxu1 }
 0x213   :  { %v1478_v63 = vadd.f32 %v1914_v49, %v2465_v28  ;;  %v1467_v52 = vadd.f32 %v2470_v39, %v945_v50  ;;  %v770_v53 = vpop.f32.mrb[35].mxu0  ;;  %v1946_v54 = vpop.f32.mrb[34].mxu1  ;;  %v1538_v2 = vmax.f32 %v1474_v44, 0.0 }
 0x214   :  { %v1470_v56 = vadd.f32 %v2465_v28, %v770_v53  ;;  %v1479_v59 = vadd.f32 %v1946_v54, %v2470_v39  ;;  %v948_v62 = vpop.f32.mrb[35].mxu1  ;;  %v1530_v6 = vmax.f32 %v1466_v47, 0.0  ;;  %v1539_v7 = vmax.f32 %v1475_v61, 0.0 }
 0x215   :  { %v1542_v57 = vmax.f32 %v1478_v63, 0.0  ;;  %v1471_v4 = vadd.f32 %v2470_v39, %v948_v62  ;;  %v1531_v0 = vmax.f32 %v1467_v52, 0.0 }
 0x216   :  { %v1534_v58 = vmax.f32 %v1470_v56, 0.0  ;;  %v1543_v8 = vmax.f32 %v1479_v59, 0.0 }
 0x217   :  { %v1598_v9 = vpack.c.bf16 %v1542_v57, %v1538_v2  ;;  %v1535_v10 = vmax.f32 %v1471_v4, 0.0 }
 0x218   :  { %v1594_v1 = vpack.c.bf16 %v1534_v58, %v1530_v6  ;;  %v1599_v11 = vpack.c.bf16 %v1543_v8, %v1539_v7 }
 0x219   :  { %v1595_v13 = vpack.c.bf16 %v1535_v10, %v1531_v0 }
 0x21b   :  { %1655 = vmatprep.subr.bf16.mxu1 %v1595_v13 }
 0x21c   :  { %1656 = vmatpush1.bf16.xpose.msra.mxu1 %v1594_v1 }
 0x21d   :  { %1657 = vmatprep.subr.bf16.mxu1 %v1599_v11 }
 0x220   :  { %v1917_v14 = vpop.f32.mrb[36].mxu0 }
 0x221   :  { %v1490_v17 = vadd.f32 %v1917_v14, %v2465_v28  ;;  %v783_v19 = vpop.f32.mrb[37].mxu0  ;;  %v1949_v20 = vpop.f32.mrb[36].mxu1 }
 0x222   :  { %v1482_v21 = vadd.f32 %v2465_v28, %v783_v19  ;;  %v1491_v22 = vadd.f32 %v1949_v20, %v2470_v39  ;;  %v1918_v24 = vpop.f32.mrb[38].mxu0  ;;  %v961_v26 = vpop.f32.mrb[37].mxu1 }
 0x223   :  { %v1494_v29 = vadd.f32 %v1918_v24, %v2465_v28  ;;  %v1483_v30 = vadd.f32 %v2470_v39, %v961_v26  ;;  %v786_v31 = vpop.f32.mrb[39].mxu0  ;;  %v1950_v3 = vpop.f32.mrb[38].mxu1  ;;  %v1554_v34 = vmax.f32 %v1490_v17, 0.0 }
 0x224   :  { %v1486_v32 = vadd.f32 %v2465_v28, %v786_v31  ;;  %v1495_v5 = vadd.f32 %v1950_v3, %v2470_v39  ;;  %v964_v33 = vpop.f32.mrb[39].mxu1  ;;  %1658 = vmatpush1.bf16.xpose.msra.mxu1 %v1598_v9  ;;  %v1546_v38 = vmax.f32 %v1482_v21, 0.0  ;;  %v1555_v25 = vmax.f32 %v1491_v22, 0.0 }
 0x225   :  { %v1558_v35 = vmax.f32 %v1494_v29, 0.0  ;;  %v1487_v36 = vadd.f32 %v2470_v39, %v964_v33  ;;  %v1547_v12 = vmax.f32 %v1483_v30, 0.0 }
 0x226   :  { %v1550_v27 = vmax.f32 %v1486_v32, 0.0  ;;  %v1559_v37 = vmax.f32 %v1495_v5, 0.0 }
 0x227   :  { %v1606_v40 = vpack.c.bf16 %v1558_v35, %v1554_v34  ;;  %v1551_v51 = vmax.f32 %v1487_v36, 0.0  ;;  %v2513_v34 = vrot.slane %v2458_v48, %v129_v15 }
 0x228   :  { %v1602_v23 = vpack.c.bf16 %v1550_v27, %v1546_v38  ;;  %v1607_v42 = vpack.c.bf16 %v1559_v37, %v1555_v25  ;;  %v2519_v25 = vrot.slane %v2458_v48, %v133_v18 }
 0x229   :  { %v1603_v43 = vpack.c.bf16 %v1551_v51, %v1547_v12 }
 0x22b   :  { %1659 = vmatprep.subr.bf16.mxu1 %v1603_v43 }
 0x22c   :  { %1660 = vmatpush1.bf16.xpose.msra.mxu1 %v1602_v23 }
 0x22d   :  { %1661 = vmatprep.subr.bf16.mxu1 %v1607_v42 }
 0x230   :  { %v1921_v44 = vpop.f32.mrb[40].mxu0 }
 0x231   :  { %v1506_v45 = vadd.f32 %v1921_v44, %v2465_v28  ;;  %v799_v46 = vpop.f32.mrb[41].mxu0  ;;  %v1953_v47 = vpop.f32.mrb[40].mxu1 }
 0x232   :  { %v1498_v61 = vadd.f32 %v2465_v28, %v799_v46  ;;  %v1507_v49 = vadd.f32 %v1953_v47, %v2470_v39  ;;  %v1922_v50 = vpop.f32.mrb[42].mxu0  ;;  %v977_v63 = vpop.f32.mrb[41].mxu1 }
 0x233   :  { %v1510_v52 = vadd.f32 %v1922_v50, %v2465_v28  ;;  %v1499_v53 = vadd.f32 %v2470_v39, %v977_v63  ;;  %v802_v54 = vpop.f32.mrb[43].mxu0  ;;  %v1954_v55 = vpop.f32.mrb[42].mxu1  ;;  %v1570_v2 = vmax.f32 %v1506_v45, 0.0 }
 0x234   :  { %v1502_v56 = vadd.f32 %v2465_v28, %v802_v54  ;;  %v1511_v59 = vadd.f32 %v1954_v55, %v2470_v39  ;;  %v980_v62 = vpop.f32.mrb[43].mxu1  ;;  %1662 = vmatpush1.bf16.xpose.msra.mxu1 %v1606_v40  ;;  %v1562_v6 = vmax.f32 %v1498_v61, 0.0  ;;  %v1571_v7 = vmax.f32 %v1507_v49, 0.0 }
 0x235   :  { %v1574_v57 = vmax.f32 %v1510_v52, 0.0  ;;  %v1503_v4 = vadd.f32 %v2470_v39, %v980_v62  ;;  %v1563_v0 = vmax.f32 %v1499_v53, 0.0 }
 0x236   :  { %v1566_v58 = vmax.f32 %v1502_v56, 0.0  ;;  %v1575_v8 = vmax.f32 %v1511_v59, 0.0 }
 0x237   :  { %v1614_v9 = vpack.c.bf16 %v1574_v57, %v1570_v2  ;;  %v1567_v10 = vmax.f32 %v1503_v4, 0.0 }
 0x238   :  { %v1610_v1 = vpack.c.bf16 %v1566_v58, %v1562_v6  ;;  %v1615_v11 = vpack.c.bf16 %v1575_v8, %v1571_v7 }
 0x239   :  { %v1611_v13 = vpack.c.bf16 %v1567_v10, %v1563_v0 }
 0x23b   :  { %1663 = vmatprep.subr.bf16.mxu1 %v1611_v13 }
 0x23c   :  { %1664 = vmatpush1.bf16.xpose.msra.mxu1 %v1610_v1 }
 0x23d   :  { %1665 = vmatprep.subr.bf16.mxu1 %v1615_v11 }
 0x240   :  { %v1925_v14 = vpop.f32.mrb[44].mxu0 }
 0x241   :  { %v1522_v17 = vadd.f32 %v1925_v14, %v2465_v28  ;;  %v815_v19 = vpop.f32.mrb[45].mxu0  ;;  %v1957_v20 = vpop.f32.mrb[44].mxu1 }
 0x242   :  { %v1514_v21 = vadd.f32 %v2465_v28, %v815_v19  ;;  %v1523_v22 = vadd.f32 %v1957_v20, %v2470_v39  ;;  %v1926_v24 = vpop.f32.mrb[46].mxu0  ;;  %v993_v26 = vpop.f32.mrb[45].mxu1 }
 0x243   :  { %v1526_v29 = vadd.f32 %v1926_v24, %v2465_v28  ;;  %v1515_v30 = vadd.f32 %v2470_v39, %v993_v26  ;;  %v818_v31 = vpop.f32.mrb[47].mxu0  ;;  %v1958_v3 = vpop.f32.mrb[46].mxu1  ;;  %v1586_v35 = vmax.f32 %v1522_v17, 0.0 }
 0x244   :  { %v1518_v32 = vadd.f32 %v2465_v28, %v818_v31  ;;  %v1527_v5 = vadd.f32 %v1958_v3, %v2470_v39  ;;  %v996_v33 = vpop.f32.mrb[47].mxu1  ;;  %1666 = vmatpush1.bf16.xpose.msra.mxu1 %v1614_v9  ;;  %v1578_v27 = vmax.f32 %v1514_v21, 0.0  ;;  %v1587_v28 = vmax.f32 %v1523_v22, 0.0 }
 0x245   :  { %v1590_v36 = vmax.f32 %v1526_v29, 0.0  ;;  %v1519_v38 = vadd.f32 %v2470_v39, %v996_v33  ;;  %v1579_v51 = vmax.f32 %v1515_v30, 0.0 }
 0x246   :  { %v1582_v37 = vmax.f32 %v1518_v32, 0.0  ;;  %v1591_v40 = vmax.f32 %v1527_v5, 0.0 }
 0x247   :  { %v1622_v12 = vpack.c.bf16 %v1590_v36, %v1586_v35  ;;  %v1583_v23 = vmax.f32 %v1519_v38, 0.0 }
 0x248   :  { %v1618_v42 = vpack.c.bf16 %v1582_v37, %v1578_v27  ;;  %v1623_v43 = vpack.c.bf16 %v1591_v40, %v1587_v28  ;;  %v1977_v15 = vpop.f32.mrb[48].mxu0 }
 0x249   :  { %v1619_v44 = vpack.c.bf16 %v1583_v23, %v1579_v51  ;;  %v1476_v45 = vadd.f32 %v1977_v15, %v2513_v34  ;;  %v1123_v46 = vpop.f32.mrb[49].mxu0  ;;  %v2009_v39 = vpop.f32.mrb[48].mxu1 }
 0x24a   :  { %v1468_v60 = vadd.f32 %v2513_v34, %v1123_v46  ;;  %v1477_v18 = vadd.f32 %v2009_v39, %v2519_v25  ;;  %v1978_v48 = vpop.f32.mrb[50].mxu0  ;;  %v1301_v47 = vpop.f32.mrb[49].mxu1 }
 0x24b   :  { %v1480_v61 = vadd.f32 %v1978_v48, %v2513_v34  ;;  %v1469_v49 = vadd.f32 %v2519_v25, %v1301_v47  ;;  %v1126_v50 = vpop.f32.mrb[51].mxu0  ;;  %v2010_v63 = vpop.f32.mrb[50].mxu1  ;;  %1667 = vmatprep.subr.bf16.mxu1 %v1619_v44  ;;  %v1540_v55 = vmax.f32 %v1476_v45, 0.0 }
 0x24c   :  { %v1472_v52 = vadd.f32 %v2513_v34, %v1126_v50  ;;  %v1481_v53 = vadd.f32 %v2010_v63, %v2519_v25  ;;  %v1304_v54 = vpop.f32.mrb[51].mxu1  ;;  %1668 = vmatpush1.bf16.xpose.msra.mxu1 %v1618_v42  ;;  %v1532_v62 = vmax.f32 %v1468_v60, 0.0  ;;  %v1541_v2 = vmax.f32 %v1477_v18, 0.0 }
 0x24d   :  { %v1544_v56 = vmax.f32 %v1480_v61, 0.0  ;;  %v1473_v59 = vadd.f32 %v2519_v25, %v1304_v54  ;;  %1669 = vmatprep.subr.bf16.mxu1 %v1623_v43  ;;  %v1533_v7 = vmax.f32 %v1469_v49, 0.0 }
 0x24e   :  { %v1536_v57 = vmax.f32 %v1472_v52, 0.0  ;;  %v1545_v4 = vmax.f32 %v1481_v53, 0.0 }
 0x24f   :  { %v1600_v6 = vpack.c.bf16 %v1544_v56, %v1540_v55  ;;  %v1537_v58 = vmax.f32 %v1473_v59, 0.0 }
 0x250   :  { %v1596_v8 = vpack.c.bf16 %v1536_v57, %v1532_v62  ;;  %v1601_v9 = vpack.c.bf16 %v1545_v4, %v1541_v2  ;;  %v1981_v0 = vpop.f32.mrb[52].mxu0 }
 0x251   :  { %v1597_v10 = vpack.c.bf16 %v1537_v58, %v1533_v7  ;;  %v1492_v1 = vadd.f32 %v1981_v0, %v2513_v34  ;;  %v2013_v11 = vpop.f32.mrb[52].mxu1  ;;  %v1139_v13 = vpop.f32.mrb[53].mxu0 }
 0x252   :  { %v1493_v14 = vadd.f32 %v2013_v11, %v2519_v25  ;;  %v1484_v17 = vadd.f32 %v2513_v34, %v1139_v13  ;;  %v1317_v19 = vpop.f32.mrb[53].mxu1  ;;  %v1982_v20 = vpop.f32.mrb[54].mxu0 }
 0x253   :  { %v1556_v21 = vmax.f32 %v1492_v1, 0.0  ;;  %1695 = vmatprep.subr.bf16.mxu0 %v1597_v10  ;;  %v1485_v22 = vadd.f32 %v2519_v25, %v1317_v19  ;;  %v1496_v24 = vadd.f32 %v1982_v20, %v2513_v34  ;;  %v2014_v26 = vpop.f32.mrb[54].mxu1  ;;  %v1142_v29 = vpop.f32.mrb[55].mxu0 }
 0x254   :  { %v1557_v30 = vmax.f32 %v1493_v14, 0.0  ;;  %v1548_v31 = vmax.f32 %v1484_v17, 0.0  ;;  %1670 = vmatpush1.bf16.xpose.msra.mxu1 %v1622_v12  ;;  %1696 = vmatpush1.bf16.xpose.msra.mxu0 %v1596_v8  ;;  %v1497_v3 = vadd.f32 %v2014_v26, %v2519_v25  ;;  %v1488_v32 = vadd.f32 %v2513_v34, %v1142_v29  ;;  %v1320_v5 = vpop.f32.mrb[55].mxu1 }
 0x255   :  { %v1549_v33 = vmax.f32 %v1485_v22, 0.0  ;;  %v1560_v35 = vmax.f32 %v1496_v24, 0.0  ;;  %1697 = vmatprep.subr.bf16.mxu0 %v1601_v9  ;;  %v1489_v36 = vadd.f32 %v2519_v25, %v1320_v5 }
 0x256   :  { %v1561_v38 = vmax.f32 %v1497_v3, 0.0  ;;  %v1552_v27 = vmax.f32 %v1488_v32, 0.0 }
 0x257   :  { %v2537_v28 = vpack.c.bf16 %v1560_v35, %v1556_v21  ;;  %v1553_v37 = vmax.f32 %v1489_v36, 0.0 }
 0x258   :  { %v1609_v40 = vpack.c.bf16 %v1561_v38, %v1557_v30  ;;  %v1604_v51 = vpack.c.bf16 %v1552_v27, %v1548_v31  ;;  %v1985_v23 = vpop.f32.mrb[56].mxu0 }
 0x259   :  { %v1605_v12 = vpack.c.bf16 %v1553_v37, %v1549_v33  ;;  %v1508_v42 = vadd.f32 %v1985_v23, %v2513_v34  ;;  %v2017_v43 = vpop.f32.mrb[56].mxu1  ;;  %v1155_v15 = vpop.f32.mrb[57].mxu0 }
 0x25a   :  { %v1509_v44 = vadd.f32 %v2017_v43, %v2519_v25  ;;  %v1500_v45 = vadd.f32 %v2513_v34, %v1155_v15  ;;  %v1333_v46 = vpop.f32.mrb[57].mxu1  ;;  %v1986_v39 = vpop.f32.mrb[58].mxu0 }
 0x25b   :  { %v1572_v60 = vmax.f32 %v1508_v42, 0.0  ;;  %v1501_v18 = vadd.f32 %v2519_v25, %v1333_v46  ;;  %v1512_v48 = vadd.f32 %v1986_v39, %v2513_v34  ;;  %v2018_v47 = vpop.f32.mrb[58].mxu1  ;;  %v1158_v61 = vpop.f32.mrb[59].mxu0  ;;  %1688 = vmatmul.mubr.bf16.vlgmr.msra.gmra.mrb[64].mxu1 %v2453_v16 }
 0x25c   :  { %1698 = vmatpush1.bf16.xpose.msra.mxu0 %v1600_v6  ;;  %v1573_v49 = vmax.f32 %v1509_v44, 0.0  ;;  %v1564_v50 = vmax.f32 %v1500_v45, 0.0  ;;  %v1513_v63 = vadd.f32 %v2018_v47, %v2519_v25  ;;  %v1504_v52 = vadd.f32 %v2513_v34, %v1158_v61  ;;  %v1336_v53 = vpop.f32.mrb[59].mxu1 }
 0x25d   :  { %1699 = vmatprep.subr.bf16.mxu0 %v1605_v12  ;;  %v1565_v54 = vmax.f32 %v1501_v18, 0.0  ;;  %v1576_v55 = vmax.f32 %v1512_v48, 0.0  ;;  %v1505_v56 = vadd.f32 %v2519_v25, %v1336_v53 }
 0x25e   :  { %v1577_v59 = vmax.f32 %v1513_v63, 0.0  ;;  %v1568_v62 = vmax.f32 %v1504_v52, 0.0 }
 0x25f   :  { %v1616_v2 = vpack.c.bf16 %v1576_v55, %v1572_v60  ;;  %v1569_v57 = vmax.f32 %v1505_v56, 0.0 }
 0x260   :  { %v1617_v4 = vpack.c.bf16 %v1577_v59, %v1573_v49  ;;  %v1612_v7 = vpack.c.bf16 %v1568_v62, %v1564_v50  ;;  %v1989_v16 = vpop.f32.mrb[60].mxu0 }
 0x261   :  { %v1613_v6 = vpack.c.bf16 %v1569_v57, %v1565_v54  ;;  %v1524_v58 = vadd.f32 %v1989_v16, %v2513_v34  ;;  %v2021_v8 = vpop.f32.mrb[60].mxu1  ;;  %v1171_v9 = vpop.f32.mrb[61].mxu0 }
 0x262   :  { %v1525_v0 = vadd.f32 %v2021_v8, %v2519_v25  ;;  %v1516_v10 = vadd.f32 %v2513_v34, %v1171_v9  ;;  %v1349_v1 = vpop.f32.mrb[61].mxu1  ;;  %v1990_v11 = vpop.f32.mrb[62].mxu0 }
 0x263   :  { %v1588_v13 = vmax.f32 %v1524_v58, 0.0  ;;  %v1517_v14 = vadd.f32 %v2519_v25, %v1349_v1  ;;  %v1528_v17 = vadd.f32 %v1990_v11, %v2513_v34  ;;  %v2022_v19 = vpop.f32.mrb[62].mxu1  ;;  %v1174_v20 = vpop.f32.mrb[63].mxu0 }
 0x264   :  { %1700 = vmatpush1.bf16.xpose.msra.mxu0 %v1604_v51  ;;  %v1589_v21 = vmax.f32 %v1525_v0, 0.0  ;;  %v1580_v22 = vmax.f32 %v1516_v10, 0.0  ;;  %v1529_v24 = vadd.f32 %v2022_v19, %v2519_v25  ;;  %v1520_v26 = vadd.f32 %v2513_v34, %v1174_v20  ;;  %v1352_v29 = vpop.f32.mrb[63].mxu1  ;;  %v1631_v51 = vpop.permute.xlu0 %1630 }
 0x265   :  { %1701 = vmatprep.subr.bf16.mxu0 %v1609_v40  ;;  %v1581_v30 = vmax.f32 %v1517_v14, 0.0  ;;  %v1592_v31 = vmax.f32 %v1528_v17, 0.0  ;;  %v1521_v3 = vadd.f32 %v2519_v25, %v1352_v29 }
 0x266   :  { %v1593_v32 = vmax.f32 %v1529_v24, 0.0  ;;  %v1584_v5 = vmax.f32 %v1520_v26, 0.0 }
 0x267   :  { %v1624_v33 = vpack.c.bf16 %v1592_v31, %v1588_v13  ;;  %v1585_v35 = vmax.f32 %v1521_v3, 0.0 }
 0x268   :  { %v1625_v36 = vpack.c.bf16 %v1593_v32, %v1589_v21  ;;  %v1620_v38 = vpack.c.bf16 %v1584_v5, %v1580_v22 }
 0x269   :  { %v1621_v27 = vpack.c.bf16 %v1585_v35, %v1581_v30 }
 0x26c   :  { %1702 = vmatpush1.bf16.xpose.msra.mxu0 %v2537_v28 }
 0x26d   :  { %1703 = vmatprep.subr.bf16.mxu0 %v1613_v6 }
 0x274   :  { %1704 = vmatpush1.bf16.xpose.msra.mxu0 %v1612_v7 }
 0x275   :  { %1705 = vmatprep.subr.bf16.mxu0 %v1617_v4 }
 0x27c   :  { %1706 = vmatpush1.bf16.xpose.msra.mxu0 %v1616_v2 }
 0x27d   :  { %1707 = vmatprep.subr.bf16.mxu0 %v1621_v27 }
 0x284   :  { %1708 = vmatpush1.bf16.xpose.msra.mxu0 %v1620_v38 }
 0x285   :  { %1709 = vmatprep.subr.bf16.mxu0 %v1625_v36 }
 0x28c   :  { %1710 = vmatpush1.bf16.xpose.msra.mxu0 %v1624_v33 }
 0x293   :  { %1728 = vmatmul.mubr.bf16.vlgmr.msra.gmra.mrb[64].mxu0 %v2472_v41 }
 0x32e   :  { %v1689_v34 = vpop.f32.mrb[64].mxu1 }
 0x32f   :  { %v1691_v25 = vpop.f32.mrb[65].mxu1  ;;  %v1690_v23 = vadd.f32 %v1689_v34, %v1631_v51 }
 0x330   :  { %v1692_v37 = vpop.f32.mrb[66].mxu1 }
 0x331   :  { %v1693_v40 = vpop.f32.mrb[67].mxu1 }
 0x366   :  { %v1729_v12 = vpop.f32.mrb[64].mxu0 }
 0x367   :  { %v1730_v42 = vadd.f32 %v1729_v12, %v1690_v23  ;;  %v1731_v43 = vpop.f32.mrb[65].mxu0 }
 0x368   :  { %v1732_v28 = vpop.f32.mrb[66].mxu0 }
 0x369   :  { %v1830_v15 = vmul.f32 -1.442695, %v1730_v42  ;;  %v1733_v44 = vpop.f32.mrb[67].mxu0 }
 0x36b   :  { %2125 = vpow2.f32 %v1830_v15 }
 0x375   :  { %v2126_v45 = vpop.eup %2125 }
 0x376   :  { %v1738_v46 = vadd.f32 1.0, %v2126_v45 }
 0x378   :  { %2127 = vrcp.f32 %v1738_v46 }
 0x382   :  { %v2128_v41 = vpop.eup %2127 }
 0x383   :  { %1741 = vst [vmem:[#allocation9] sm:$0xf] %v2128_v41 }
 0x384   :  { %2206 = shalt.err (!%p2203_p0)
}
 0x385   :  { %s2207_s24 = scalar_lea.hbm %s2577_s7, 64 }
 0x386   :  { %p2208_p1 = scmp.ne.s32.totalorder %s2577_s7, %s2207_s24  ;;  %p2211_p2 = scmp.lt.u32.totalorder %s2207_s24, %s2577_s7 }
 0x388   :  { %p2213_p3 = pnand %p2211_p2, %p2208_p1 }
 0x38a   :  { %2216 = shalt.err (!%p2213_p3)
}
 0x38b   :  { %1751 = dma.vmem_to_hbm [thread:$0]  %s1749_s20, 64, %s2577_s7, [#allocation5]  }
 0x38c   :  { %2221 = dma.done.wait [#allocation5], 64  }
 0x38d   :  { %2222 = vsyncadd [#allocation5], 4294967232 }
 0x38e   :  { %1755 = vsyncpa [#allocation4], 1 }
 0x38f   :  { %1756 = vsyncpa [#allocation7], 1 }
 0x390   :  { %1757 = vsyncpa [#allocation5], 1 }

</bundles_post_ra>
